<compile_context>
chip_gen: v7x
topology: tpu7x:2x2x1
jax: 0.10.0
libtpu: 0.0.40
codegen_flags: <defaults>
</compile_context>

<pallas_src>
import functools

import jax
import jax.numpy as jnp
from jax import lax
from jax.experimental import pallas as pl
from jax.experimental.pallas import tpu as pltpu


def _round_up(x: int, m: int) -> int:
    return (x + m - 1) // m * m


def _resident_spec(shape, index_map):
    """BlockSpec for a grid-invariant operand: request single buffering."""
    try:
        return pl.BlockSpec(shape, index_map, pipeline_mode=pl.Buffered(1))
    except (TypeError, AttributeError):
        # Older jax without pipeline_mode on BlockSpec: default double buffering.
        return pl.BlockSpec(shape, index_map)


def _gru_rec_kernel(proj_ref, wh_rz_ref, wh_n_ref, bhn_ref, o_ref, h_scratch,
                    *, seq_len, t_blk, unroll):
    """One grid step == one chunk of t_blk GRU timesteps for one batch block.

    proj_ref:   (t_blk, B_blk, 3*H_pad)  pre-projected input (x@Wx + folded biases), bf16
    wh_rz_ref:  (H_pad, 2*H_pad)         recurrent weight for r,z gates (resident), bf16
    wh_n_ref:   (H_pad, H_pad)           recurrent weight for n gate (resident), bf16
    bhn_ref:    (1, H_pad)               n-gate recurrent bias (cannot be folded), f32
    o_ref:      (B_blk, H_pad)           final hidden state (written on last chunk)
    h_scratch:  (B_blk, H_pad)           hidden state carried across chunks (VMEM, f32)
    """
    c = pl.program_id(1)                 # time-chunk index (sequential axis)
    n_chunks = pl.num_programs(1)
    b_blk, h_pad = h_scratch.shape

    @pl.when(c == 0)
    def _():
        h_scratch[...] = jnp.zeros_like(h_scratch)

    # Loop invariants: read / broadcast once per chunk, reused every timestep.
    wh_rz = wh_rz_ref[...]
    wh_n = wh_n_ref[...]
    mxu_dtype = wh_rz.dtype
    bhn = jnp.broadcast_to(bhn_ref[...].astype(jnp.float32), (b_blk, h_pad))

    def make_step(masked):
        def step(i, h):
            xg = proj_ref[i].astype(jnp.float32)                  # (B_blk, 3*H_pad)
            hc = h.astype(mxu_dtype)                              # bf16 MXU operand
            # r/z dot first so their sigmoids (EUP) overlap the n-gate dot (MXU).
            h2h_rz = jnp.dot(hc, wh_rz, preferred_element_type=jnp.float32)
            r = jax.nn.sigmoid(xg[:, :h_pad] + h2h_rz[:, :h_pad])
            z = jax.nn.sigmoid(xg[:, h_pad:2 * h_pad] + h2h_rz[:, h_pad:])
            h2h_n = jnp.dot(hc, wh_n, preferred_element_type=jnp.float32) + bhn
            n = jnp.tanh(xg[:, 2 * h_pad:] + r * h2h_n)
            h_new = (1.0 - z) * n + z * h
            if masked:
                # Only the padded tail timesteps of the final chunk hit this.
                h_new = jnp.where(c * t_blk + i < seq_len, h_new, h)
            return h_new
        return step

    def run(masked):
        h_scratch[...] = lax.fori_loop(0, t_blk, make_step(masked),
                                       h_scratch[...], unroll=unroll)

    if seq_len % t_blk != 0:
        # Tail mask off the hot loop: only the last chunk pays the compare/select.
        @pl.when(c < n_chunks - 1)
        def _():
            run(False)

        @pl.when(c == n_chunks - 1)
        def _():
            run(True)
    else:
        run(False)

    @pl.when(c == n_chunks - 1)
    def _():
        o_ref[...] = h_scratch[...].astype(o_ref.dtype)


@functools.partial(jax.jit, static_argnames=("hidden_size", "t_blk", "compute_dtype"))
def gru_forward(inputs, wx, bx, wh, bh, *, hidden_size, t_blk=16,
                compute_dtype=jnp.bfloat16):
    """inputs: (batch, seq, input_size) -> final hidden state (batch, hidden_size).

    wx: (input_size, 3*hidden)  pre-transposed x2h weight
    bx: (3*hidden,)
    wh: (hidden, 3*hidden)      pre-transposed h2h weight
    bh: (3*hidden,)
    compute_dtype: storage dtype for the streamed projection and MXU weight
      operands (bf16 by default; f32 for exact parity).  Gate math is always f32.
    """
    B, S, I = inputs.shape
    H = hidden_size
    H_pad = _round_up(H, 128)            # lane-aligned gate width
    B_pad = _round_up(B, 8)              # sublane-aligned batch
    f32 = jnp.float32
    cdt = jnp.dtype(compute_dtype)

    # v7x megacore: split the batch across a leading 'parallel' grid axis when
    # each half is still sublane-aligned.  Size-1 axis otherwise (harmless).
    n_bblocks = 2 if (B_pad % 16 == 0) else 1
    B_blk = B_pad // n_bblocks

    # Auto-size the time chunk so the double-buffered proj slab stays within a
    # conservative budget that also fits v7x's 64 MiB VMEM next to the weights.
    proj_slab_budget = 16 * 1024 * 1024                      # bytes for 2 buffers
    per_step_bytes = B_blk * 3 * H_pad * cdt.itemsize
    t_max = max(1, proj_slab_budget // (2 * per_step_bytes))
    t_blk = int(max(1, min(t_blk, S, t_max)))
    S_pad = _round_up(S, t_blk)
    n_chunks = S_pad // t_blk
    unroll = int(min(t_blk, 8))          # cap unroll so vregs don't spill

    # --- gate-separated, lane-padded parameter layout ------------------------
    wx_g = wx.reshape(I, 3, H).astype(f32)
    wh_g = wh.reshape(H, 3, H).astype(f32)
    bx_g = bx.reshape(3, H).astype(f32)
    bh_g = bh.reshape(3, H).astype(f32)

    # Fold biases: r/z gates absorb (bx + bh) into the precomputed projection;
    # the n gate absorbs only bx (bh_n must stay inside r * (h@W_hn + bh_n)).
    b_fold = bx_g + bh_g.at[2].set(0.0)                               # (3, H)

    wx_p = jnp.pad(wx_g, ((0, 0), (0, 0), (0, H_pad - H))).reshape(I, 3 * H_pad)
    wh_p = jnp.pad(wh_g, ((0, H_pad - H), (0, 0), (0, H_pad - H)))    # (H_pad, 3, H_pad)
    wh_rz_p = wh_p[:, :2, :].reshape(H_pad, 2 * H_pad).astype(cdt)    # MXU bf16
    wh_n_p = wh_p[:, 2, :].reshape(H_pad, H_pad).astype(cdt)          # MXU bf16
    b_fold_p = jnp.pad(b_fold, ((0, 0), (0, H_pad - H))).reshape(3 * H_pad)
    bhn_p = jnp.pad(bh_g[2], (0, H_pad - H)).reshape(1, H_pad)        # f32

    # --- input projection hoisted off the serial path: one big f32 GEMM ------
    # Transpose/pad the SMALL (S,B,I) tensor, not the big (S,B,3H) projection,
    # so the GEMM writes the kernel's layout directly (no extra HBM passes).
    x_t = jnp.transpose(inputs.astype(f32), (1, 0, 2))                # (S, B, I)
    x_t = jnp.pad(x_t, ((0, S_pad - S), (0, B_pad - B), (0, 0)))      # (S_pad, B_pad, I)
    proj = x_t.reshape(S_pad * B_pad, I) @ wx_p + b_fold_p            # f32 accumulate
    proj = proj.reshape(S_pad, B_pad, 3 * H_pad).astype(cdt)          # bf16 stream

    # --- VMEM budget (generation-aware headroom) ------------------------------
    weight_bytes = (H_pad * 3 * H_pad) * cdt.itemsize + H_pad * 4
    proj_bytes = 2 * t_blk * B_blk * 3 * H_pad * cdt.itemsize         # double-buffered
    misc_bytes = 4 * B_blk * H_pad * 4
    needed = weight_bytes + proj_bytes + misc_bytes
    vmem_limit = int(min(max(2 * needed, 32 * 1024 * 1024), 100 * 1024 * 1024))

    grid_spec = pltpu.PrefetchScalarGridSpec(
        num_scalar_prefetch=0,
        grid=(n_bblocks, n_chunks),
        in_specs=[
            # Streamed x2h chunk.  TODO(synk): on v5e, if the proj DMA is exposed
            # at large B, raise this spec to pipeline_mode=pl.Buffered(3).
            pl.BlockSpec((t_blk, B_blk, 3 * H_pad), lambda b, c: (c, b, 0)),
            _resident_spec((H_pad, 2 * H_pad), lambda b, c: (0, 0)),   # wh (r,z)
            _resident_spec((H_pad, H_pad), lambda b, c: (0, 0)),       # wh (n)
            _resident_spec((1, H_pad), lambda b, c: (0, 0)),           # bh_n
        ],
        out_specs=pl.BlockSpec((B_blk, H_pad), lambda b, c: (b, 0)),   # per-batch-block
        scratch_shapes=[pltpu.VMEM((B_blk, H_pad), jnp.float32)],
    )

    out_padded = pl.pallas_call(
        functools.partial(_gru_rec_kernel, seq_len=S, t_blk=t_blk, unroll=unroll),
        out_shape=jax.ShapeDtypeStruct((B_pad, H_pad), inputs.dtype),
        grid_spec=grid_spec,
        compiler_params=pltpu.CompilerParams(
            dimension_semantics=("parallel", "arbitrary"),  # batch || , time sequential
            vmem_limit_bytes=vmem_limit,
        ),
    )(proj, wh_rz_p, wh_n_p, bhn_p)

    return out_padded[:B, :H]


def _gru_reference(inputs, wx, bx, wh, bh, hidden_size):
    """Pure-JAX reference mirroring the PyTorch module semantics."""
    B, S, I = inputs.shape
    H = hidden_size

    def cell(h, x_t):
        x2h = x_t @ wx + bx
        h2h = h @ wh + bh
        x_r, x_z, x_n = jnp.split(x2h, 3, axis=-1)
        h_r, h_z, h_n = jnp.split(h2h, 3, axis=-1)
        r = jax.nn.sigmoid(x_r + h_r)
        z = jax.nn.sigmoid(x_z + h_z)
        n = jnp.tanh(x_n + r * h_n)
        h_new = (1.0 - z) * n + z * h
        return h_new, None

    h0 = jnp.zeros((B, H), inputs.dtype)
    h_final, _ = jax.lax.scan(cell, h0, jnp.transpose(inputs, (1, 0, 2)))
    return h_final


if __name__ == "__main__":
    batch, seq, input_size, hidden_size = 2, 8, 4, 32

    key = jax.random.PRNGKey(0)
    k_in, k_wx, k_bx, k_wh, k_bh = jax.random.split(key, 5)

    # Deterministic parameter init, mimicking nn.Linear's U(-1/sqrt(fan_in), ...)
    bound_x = 1.0 / (input_size ** 0.5)
    bound_h = 1.0 / (hidden_size ** 0.5)
    # Weights stored pre-transposed: (in_features, 3*hidden)
    wx = jax.random.uniform(k_wx, (input_size, 3 * hidden_size),
                            jnp.float32, -bound_x, bound_x)
    bx = jax.random.uniform(k_bx, (3 * hidden_size,), jnp.float32, -bound_x, bound_x)
    wh = jax.random.uniform(k_wh, (hidden_size, 3 * hidden_size),
                            jnp.float32, -bound_h, bound_h)
    bh = jax.random.uniform(k_bh, (3 * hidden_size,), jnp.float32, -bound_h, bound_h)

    x = jax.random.normal(k_in, (batch, seq, input_size), jnp.float32)

    ref = _gru_reference(x, wx, bx, wh, bh, hidden_size)

    # Performance configuration: bf16 MXU inputs / bf16 streamed projection.
    out = gru_forward(x, wx, bx, wh, bh, hidden_size=hidden_size)
    out = jax.block_until_ready(out)
    assert out.shape == (batch, hidden_size)
    assert jnp.allclose(out, ref, atol=3e-2, rtol=3e-2), "bf16 kernel mismatch vs reference"

    # Exact-parity configuration: f32 end to end, tight tolerance.
    out_f32 = gru_forward(x, wx, bx, wh, bh, hidden_size=hidden_size,
                          compute_dtype=jnp.float32)
    out_f32 = jax.block_until_ready(out_f32)
    assert jnp.allclose(out_f32, ref, atol=1e-4, rtol=1e-4), "f32 kernel mismatch vs reference"

    print("KERNEL_OK")
</pallas_src>

<mosaic_0001>
module attributes {stable_mosaic.version = 11 : i64} {
  func.func @_gru_rec_kernel(%arg0: i32, %arg1: i32, %arg2: memref<8x8x384xbf16, #tpu.memory_space<vmem>>, %arg3: memref<128x256xbf16, #tpu.memory_space<vmem>>, %arg4: memref<128x128xbf16, #tpu.memory_space<vmem>>, %arg5: memref<1x128xf32, #tpu.memory_space<vmem>>, %arg6: memref<8x128xf32, #tpu.memory_space<vmem>>, %arg7: memref<8x128xf32, #tpu.memory_space<vmem>>) attributes {dimension_semantics = [#tpu.dimension_semantics<parallel>, #tpu.dimension_semantics<arbitrary>], iteration_bounds = array<i64: 1, 1>, scalar_prefetch = 0 : i64, scratch_operands = 1 : i64, tpu.core_type = #tpu.core_type<tc>, window_params = [{transform_indices = @transform_0, window_bounds = array<i64: 8, 8, 384>}, {pipeline_mode = #tpu.pipeline_mode<synchronous>, transform_indices = @transform_1, window_bounds = array<i64: 128, 256>}, {pipeline_mode = #tpu.pipeline_mode<synchronous>, transform_indices = @transform_2, window_bounds = array<i64: 128, 128>}, {pipeline_mode = #tpu.pipeline_mode<synchronous>, transform_indices = @transform_3, window_bounds = array<i64: 1, 128>}, {transform_indices = @transform_4, window_bounds = array<i64: 8, 128>}]} {
    %c0_i32 = arith.constant 0 : i32
    %0 = arith.cmpi eq, %arg1, %c0_i32 : i32
    %1 = arith.extui %0 : i1 to i32
    %c0_i32_0 = arith.constant 0 : i32
    %2 = arith.cmpi ne, %1, %c0_i32_0 : i32
    scf.if %2 {
      %cst_68 = arith.constant 0.000000e+00 : f32
      %277 = vector.broadcast %cst_68 : f32 to vector<8x128xf32>
      %c0_69 = arith.constant 0 : index
      %c0_70 = arith.constant 0 : index
      %278 = vector.load %arg7[%c0_69, %c0_70] : memref<8x128xf32, #tpu.memory_space<vmem>>, vector<8x128xf32>
      tpu.vector_store %arg7[%c0_69, %c0_70], %277 {strides = array<i32>} : memref<8x128xf32, #tpu.memory_space<vmem>>, vector<8x128xf32>,
    } else {
    }
    %c0 = arith.constant 0 : index
    %c0_1 = arith.constant 0 : index
    %3 = vector.load %arg3[%c0, %c0_1] : memref<128x256xbf16, #tpu.memory_space<vmem>>, vector<128x256xbf16>
    %c0_2 = arith.constant 0 : index
    %c0_3 = arith.constant 0 : index
    %4 = vector.load %arg4[%c0_2, %c0_3] : memref<128x128xbf16, #tpu.memory_space<vmem>>, vector<128x128xbf16>
    %c0_4 = arith.constant 0 : index
    %c0_5 = arith.constant 0 : index
    %5 = vector.load %arg5[%c0_4, %c0_5] : memref<1x128xf32, #tpu.memory_space<vmem>>, vector<1x128xf32>
    %6 = vector.shape_cast %5 : vector<1x128xf32> to vector<1x128xf32>
    %7 = vector.broadcast %6 : vector<1x128xf32> to vector<8x128xf32>
    %c0_6 = arith.constant 0 : index
    %c0_7 = arith.constant 0 : index
    %8 = vector.load %arg7[%c0_6, %c0_7] : memref<8x128xf32, #tpu.memory_space<vmem>>, vector<8x128xf32>
    %c0_i32_8 = arith.constant 0 : i32
    %9 = arith.index_cast %c0_i32_8 : i32 to index
    %c0_9 = arith.constant 0 : index
    %c0_10 = arith.constant 0 : index
    %10 = vector.load %arg2[%9, %c0_9, %c0_10] : memref<8x8x384xbf16, #tpu.memory_space<vmem>>, vector<1x8x384xbf16>
    %11 = vector.shape_cast %10 : vector<1x8x384xbf16> to vector<8x384xbf16>
    %12 = arith.extf %11 : vector<8x384xbf16> to vector<8x384xf32>
    %13 = arith.truncf %8 : vector<8x128xf32> to vector<8x128xbf16>
    %cst = arith.constant dense<0.000000e+00> : vector<8x256xf32>
    %14 = tpu.matmul %13, %3, %cst {dimension_numbers = #tpu.dot_dimension_numbers<[1], [0], [0], [1], [0, 0, 1, 1], [], []>} : vector<8x128xbf16>, vector<128x256xbf16>, vector<8x256xf32> -> vector<8x256xf32>
    %15 = vector.extract_strided_slice %12 {offsets = [0, 0], sizes = [8, 128], strides = [1, 1]} : vector<8x384xf32> to vector<8x128xf32>
    %16 = vector.extract_strided_slice %14 {offsets = [0, 0], sizes = [8, 128], strides = [1, 1]} : vector<8x256xf32> to vector<8x128xf32>
    %17 = arith.addf %15, %16 : vector<8x128xf32>
    %18 = arith.negf %17 : vector<8x128xf32>
    %19 = math.exp %18 : vector<8x128xf32>
    %cst_11 = arith.constant 1.000000e+00 : f32
    %20 = vector.broadcast %cst_11 : f32 to vector<8x128xf32>
    %21 = arith.addf %20, %19 : vector<8x128xf32>
    %22 = arith.divf %20, %21 : vector<8x128xf32>
    %23 = vector.extract_strided_slice %12 {offsets = [0, 128], sizes = [8, 128], strides = [1, 1]} : vector<8x384xf32> to vector<8x128xf32>
    %24 = vector.extract_strided_slice %14 {offsets = [0, 128], sizes = [8, 128], strides = [1, 1]} : vector<8x256xf32> to vector<8x128xf32>
    %25 = arith.addf %23, %24 : vector<8x128xf32>
    %26 = arith.negf %25 : vector<8x128xf32>
    %27 = math.exp %26 : vector<8x128xf32>
    %cst_12 = arith.constant 1.000000e+00 : f32
    %28 = vector.broadcast %cst_12 : f32 to vector<8x128xf32>
    %29 = arith.addf %28, %27 : vector<8x128xf32>
    %30 = arith.divf %28, %29 : vector<8x128xf32>
    %cst_13 = arith.constant dense<0.000000e+00> : vector<8x128xf32>
    %31 = tpu.matmul %13, %4, %cst_13 {dimension_numbers = #tpu.dot_dimension_numbers<[1], [0], [0], [1], [0, 0, 1, 1], [], []>} : vector<8x128xbf16>, vector<128x128xbf16>, vector<8x128xf32> -> vector<8x128xf32>
    %32 = arith.addf %31, %7 : vector<8x128xf32>
    %33 = vector.extract_strided_slice %12 {offsets = [0, 256], sizes = [8, 128], strides = [1, 1]} : vector<8x384xf32> to vector<8x128xf32>
    %34 = arith.mulf %22, %32 : vector<8x128xf32>
    %35 = arith.addf %33, %34 : vector<8x128xf32>
    %36 = math.tanh %35 : vector<8x128xf32>
    %cst_14 = arith.constant 1.000000e+00 : f32
    %37 = vector.broadcast %cst_14 : f32 to vector<8x128xf32>
    %38 = arith.subf %37, %30 : vector<8x128xf32>
    %39 = arith.mulf %38, %36 : vector<8x128xf32>
    %40 = arith.mulf %30, %8 : vector<8x128xf32>
    %41 = arith.addf %39, %40 : vector<8x128xf32>
    %c1_i32 = arith.constant 1 : i32
    %42 = arith.index_cast %c1_i32 : i32 to index
    %c0_15 = arith.constant 0 : index
    %c0_16 = arith.constant 0 : index
    %43 = vector.load %arg2[%42, %c0_15, %c0_16] : memref<8x8x384xbf16, #tpu.memory_space<vmem>>, vector<1x8x384xbf16>
    %44 = vector.shape_cast %43 : vector<1x8x384xbf16> to vector<8x384xbf16>
    %45 = arith.extf %44 : vector<8x384xbf16> to vector<8x384xf32>
    %46 = arith.truncf %41 : vector<8x128xf32> to vector<8x128xbf16>
    %cst_17 = arith.constant dense<0.000000e+00> : vector<8x256xf32>
    %47 = tpu.matmul %46, %3, %cst_17 {dimension_numbers = #tpu.dot_dimension_numbers<[1], [0], [0], [1], [0, 0, 1, 1], [], []>} : vector<8x128xbf16>, vector<128x256xbf16>, vector<8x256xf32> -> vector<8x256xf32>
    %48 = vector.extract_strided_slice %45 {offsets = [0, 0], sizes = [8, 128], strides = [1, 1]} : vector<8x384xf32> to vector<8x128xf32>
    %49 = vector.extract_strided_slice %47 {offsets = [0, 0], sizes = [8, 128], strides = [1, 1]} : vector<8x256xf32> to vector<8x128xf32>
    %50 = arith.addf %48, %49 : vector<8x128xf32>
    %51 = arith.negf %50 : vector<8x128xf32>
    %52 = math.exp %51 : vector<8x128xf32>
    %cst_18 = arith.constant 1.000000e+00 : f32
    %53 = vector.broadcast %cst_18 : f32 to vector<8x128xf32>
    %54 = arith.addf %53, %52 : vector<8x128xf32>
    %55 = arith.divf %53, %54 : vector<8x128xf32>
    %56 = vector.extract_strided_slice %45 {offsets = [0, 128], sizes = [8, 128], strides = [1, 1]} : vector<8x384xf32> to vector<8x128xf32>
    %57 = vector.extract_strided_slice %47 {offsets = [0, 128], sizes = [8, 128], strides = [1, 1]} : vector<8x256xf32> to vector<8x128xf32>
    %58 = arith.addf %56, %57 : vector<8x128xf32>
    %59 = arith.negf %58 : vector<8x128xf32>
    %60 = math.exp %59 : vector<8x128xf32>
    %cst_19 = arith.constant 1.000000e+00 : f32
    %61 = vector.broadcast %cst_19 : f32 to vector<8x128xf32>
    %62 = arith.addf %61, %60 : vector<8x128xf32>
    %63 = arith.divf %61, %62 : vector<8x128xf32>
    %cst_20 = arith.constant dense<0.000000e+00> : vector<8x128xf32>
    %64 = tpu.matmul %46, %4, %cst_20 {dimension_numbers = #tpu.dot_dimension_numbers<[1], [0], [0], [1], [0, 0, 1, 1], [], []>} : vector<8x128xbf16>, vector<128x128xbf16>, vector<8x128xf32> -> vector<8x128xf32>
    %65 = arith.addf %64, %7 : vector<8x128xf32>
    %66 = vector.extract_strided_slice %45 {offsets = [0, 256], sizes = [8, 128], strides = [1, 1]} : vector<8x384xf32> to vector<8x128xf32>
    %67 = arith.mulf %55, %65 : vector<8x128xf32>
    %68 = arith.addf %66, %67 : vector<8x128xf32>
    %69 = math.tanh %68 : vector<8x128xf32>
    %cst_21 = arith.constant 1.000000e+00 : f32
    %70 = vector.broadcast %cst_21 : f32 to vector<8x128xf32>
    %71 = arith.subf %70, %63 : vector<8x128xf32>
    %72 = arith.mulf %71, %69 : vector<8x128xf32>
    %73 = arith.mulf %63, %41 : vector<8x128xf32>
    %74 = arith.addf %72, %73 : vector<8x128xf32>
    %c2_i32 = arith.constant 2 : i32
    %75 = arith.index_cast %c2_i32 : i32 to index
    %c0_22 = arith.constant 0 : index
    %c0_23 = arith.constant 0 : index
    %76 = vector.load %arg2[%75, %c0_22, %c0_23] : memref<8x8x384xbf16, #tpu.memory_space<vmem>>, vector<1x8x384xbf16>
    %77 = vector.shape_cast %76 : vector<1x8x384xbf16> to vector<8x384xbf16>
    %78 = arith.extf %77 : vector<8x384xbf16> to vector<8x384xf32>
    %79 = arith.truncf %74 : vector<8x128xf32> to vector<8x128xbf16>
    %cst_24 = arith.constant dense<0.000000e+00> : vector<8x256xf32>
    %80 = tpu.matmul %79, %3, %cst_24 {dimension_numbers = #tpu.dot_dimension_numbers<[1], [0], [0], [1], [0, 0, 1, 1], [], []>} : vector<8x128xbf16>, vector<128x256xbf16>, vector<8x256xf32> -> vector<8x256xf32>
    %81 = vector.extract_strided_slice %78 {offsets = [0, 0], sizes = [8, 128], strides = [1, 1]} : vector<8x384xf32> to vector<8x128xf32>
    %82 = vector.extract_strided_slice %80 {offsets = [0, 0], sizes = [8, 128], strides = [1, 1]} : vector<8x256xf32> to vector<8x128xf32>
    %83 = arith.addf %81, %82 : vector<8x128xf32>
    %84 = arith.negf %83 : vector<8x128xf32>
    %85 = math.exp %84 : vector<8x128xf32>
    %cst_25 = arith.constant 1.000000e+00 : f32
    %86 = vector.broadcast %cst_25 : f32 to vector<8x128xf32>
    %87 = arith.addf %86, %85 : vector<8x128xf32>
    %88 = arith.divf %86, %87 : vector<8x128xf32>
    %89 = vector.extract_strided_slice %78 {offsets = [0, 128], sizes = [8, 128], strides = [1, 1]} : vector<8x384xf32> to vector<8x128xf32>
    %90 = vector.extract_strided_slice %80 {offsets = [0, 128], sizes = [8, 128], strides = [1, 1]} : vector<8x256xf32> to vector<8x128xf32>
    %91 = arith.addf %89, %90 : vector<8x128xf32>
    %92 = arith.negf %91 : vector<8x128xf32>
    %93 = math.exp %92 : vector<8x128xf32>
    %cst_26 = arith.constant 1.000000e+00 : f32
    %94 = vector.broadcast %cst_26 : f32 to vector<8x128xf32>
    %95 = arith.addf %94, %93 : vector<8x128xf32>
    %96 = arith.divf %94, %95 : vector<8x128xf32>
    %cst_27 = arith.constant dense<0.000000e+00> : vector<8x128xf32>
    %97 = tpu.matmul %79, %4, %cst_27 {dimension_numbers = #tpu.dot_dimension_numbers<[1], [0], [0], [1], [0, 0, 1, 1], [], []>} : vector<8x128xbf16>, vector<128x128xbf16>, vector<8x128xf32> -> vector<8x128xf32>
    %98 = arith.addf %97, %7 : vector<8x128xf32>
    %99 = vector.extract_strided_slice %78 {offsets = [0, 256], sizes = [8, 128], strides = [1, 1]} : vector<8x384xf32> to vector<8x128xf32>
    %100 = arith.mulf %88, %98 : vector<8x128xf32>
    %101 = arith.addf %99, %100 : vector<8x128xf32>
    %102 = math.tanh %101 : vector<8x128xf32>
    %cst_28 = arith.constant 1.000000e+00 : f32
    %103 = vector.broadcast %cst_28 : f32 to vector<8x128xf32>
    %104 = arith.subf %103, %96 : vector<8x128xf32>
    %105 = arith.mulf %104, %102 : vector<8x128xf32>
    %106 = arith.mulf %96, %74 : vector<8x128xf32>
    %107 = arith.addf %105, %106 : vector<8x128xf32>
    %c3_i32 = arith.constant 3 : i32
    %108 = arith.index_cast %c3_i32 : i32 to index
    %c0_29 = arith.constant 0 : index
    %c0_30 = arith.constant 0 : index
    %109 = vector.load %arg2[%108, %c0_29, %c0_30] : memref<8x8x384xbf16, #tpu.memory_space<vmem>>, vector<1x8x384xbf16>
    %110 = vector.shape_cast %109 : vector<1x8x384xbf16> to vector<8x384xbf16>
    %111 = arith.extf %110 : vector<8x384xbf16> to vector<8x384xf32>
    %112 = arith.truncf %107 : vector<8x128xf32> to vector<8x128xbf16>
    %cst_31 = arith.constant dense<0.000000e+00> : vector<8x256xf32>
    %113 = tpu.matmul %112, %3, %cst_31 {dimension_numbers = #tpu.dot_dimension_numbers<[1], [0], [0], [1], [0, 0, 1, 1], [], []>} : vector<8x128xbf16>, vector<128x256xbf16>, vector<8x256xf32> -> vector<8x256xf32>
    %114 = vector.extract_strided_slice %111 {offsets = [0, 0], sizes = [8, 128], strides = [1, 1]} : vector<8x384xf32> to vector<8x128xf32>
    %115 = vector.extract_strided_slice %113 {offsets = [0, 0], sizes = [8, 128], strides = [1, 1]} : vector<8x256xf32> to vector<8x128xf32>
    %116 = arith.addf %114, %115 : vector<8x128xf32>
    %117 = arith.negf %116 : vector<8x128xf32>
    %118 = math.exp %117 : vector<8x128xf32>
    %cst_32 = arith.constant 1.000000e+00 : f32
    %119 = vector.broadcast %cst_32 : f32 to vector<8x128xf32>
    %120 = arith.addf %119, %118 : vector<8x128xf32>
    %121 = arith.divf %119, %120 : vector<8x128xf32>
    %122 = vector.extract_strided_slice %111 {offsets = [0, 128], sizes = [8, 128], strides = [1, 1]} : vector<8x384xf32> to vector<8x128xf32>
    %123 = vector.extract_strided_slice %113 {offsets = [0, 128], sizes = [8, 128], strides = [1, 1]} : vector<8x256xf32> to vector<8x128xf32>
    %124 = arith.addf %122, %123 : vector<8x128xf32>
    %125 = arith.negf %124 : vector<8x128xf32>
    %126 = math.exp %125 : vector<8x128xf32>
    %cst_33 = arith.constant 1.000000e+00 : f32
    %127 = vector.broadcast %cst_33 : f32 to vector<8x128xf32>
    %128 = arith.addf %127, %126 : vector<8x128xf32>
    %129 = arith.divf %127, %128 : vector<8x128xf32>
    %cst_34 = arith.constant dense<0.000000e+00> : vector<8x128xf32>
    %130 = tpu.matmul %112, %4, %cst_34 {dimension_numbers = #tpu.dot_dimension_numbers<[1], [0], [0], [1], [0, 0, 1, 1], [], []>} : vector<8x128xbf16>, vector<128x128xbf16>, vector<8x128xf32> -> vector<8x128xf32>
    %131 = arith.addf %130, %7 : vector<8x128xf32>
    %132 = vector.extract_strided_slice %111 {offsets = [0, 256], sizes = [8, 128], strides = [1, 1]} : vector<8x384xf32> to vector<8x128xf32>
    %133 = arith.mulf %121, %131 : vector<8x128xf32>
    %134 = arith.addf %132, %133 : vector<8x128xf32>
    %135 = math.tanh %134 : vector<8x128xf32>
    %cst_35 = arith.constant 1.000000e+00 : f32
    %136 = vector.broadcast %cst_35 : f32 to vector<8x128xf32>
    %137 = arith.subf %136, %129 : vector<8x128xf32>
    %138 = arith.mulf %137, %135 : vector<8x128xf32>
    %139 = arith.mulf %129, %107 : vector<8x128xf32>
    %140 = arith.addf %138, %139 : vector<8x128xf32>
    %c4_i32 = arith.constant 4 : i32
    %141 = arith.index_cast %c4_i32 : i32 to index
    %c0_36 = arith.constant 0 : index
    %c0_37 = arith.constant 0 : index
    %142 = vector.load %arg2[%141, %c0_36, %c0_37] : memref<8x8x384xbf16, #tpu.memory_space<vmem>>, vector<1x8x384xbf16>
    %143 = vector.shape_cast %142 : vector<1x8x384xbf16> to vector<8x384xbf16>
    %144 = arith.extf %143 : vector<8x384xbf16> to vector<8x384xf32>
    %145 = arith.truncf %140 : vector<8x128xf32> to vector<8x128xbf16>
    %cst_38 = arith.constant dense<0.000000e+00> : vector<8x256xf32>
    %146 = tpu.matmul %145, %3, %cst_38 {dimension_numbers = #tpu.dot_dimension_numbers<[1], [0], [0], [1], [0, 0, 1, 1], [], []>} : vector<8x128xbf16>, vector<128x256xbf16>, vector<8x256xf32> -> vector<8x256xf32>
    %147 = vector.extract_strided_slice %144 {offsets = [0, 0], sizes = [8, 128], strides = [1, 1]} : vector<8x384xf32> to vector<8x128xf32>
    %148 = vector.extract_strided_slice %146 {offsets = [0, 0], sizes = [8, 128], strides = [1, 1]} : vector<8x256xf32> to vector<8x128xf32>
    %149 = arith.addf %147, %148 : vector<8x128xf32>
    %150 = arith.negf %149 : vector<8x128xf32>
    %151 = math.exp %150 : vector<8x128xf32>
    %cst_39 = arith.constant 1.000000e+00 : f32
    %152 = vector.broadcast %cst_39 : f32 to vector<8x128xf32>
    %153 = arith.addf %152, %151 : vector<8x128xf32>
    %154 = arith.divf %152, %153 : vector<8x128xf32>
    %155 = vector.extract_strided_slice %144 {offsets = [0, 128], sizes = [8, 128], strides = [1, 1]} : vector<8x384xf32> to vector<8x128xf32>
    %156 = vector.extract_strided_slice %146 {offsets = [0, 128], sizes = [8, 128], strides = [1, 1]} : vector<8x256xf32> to vector<8x128xf32>
    %157 = arith.addf %155, %156 : vector<8x128xf32>
    %158 = arith.negf %157 : vector<8x128xf32>
    %159 = math.exp %158 : vector<8x128xf32>
    %cst_40 = arith.constant 1.000000e+00 : f32
    %160 = vector.broadcast %cst_40 : f32 to vector<8x128xf32>
    %161 = arith.addf %160, %159 : vector<8x128xf32>
    %162 = arith.divf %160, %161 : vector<8x128xf32>
    %cst_41 = arith.constant dense<0.000000e+00> : vector<8x128xf32>
    %163 = tpu.matmul %145, %4, %cst_41 {dimension_numbers = #tpu.dot_dimension_numbers<[1], [0], [0], [1], [0, 0, 1, 1], [], []>} : vector<8x128xbf16>, vector<128x128xbf16>, vector<8x128xf32> -> vector<8x128xf32>
    %164 = arith.addf %163, %7 : vector<8x128xf32>
    %165 = vector.extract_strided_slice %144 {offsets = [0, 256], sizes = [8, 128], strides = [1, 1]} : vector<8x384xf32> to vector<8x128xf32>
    %166 = arith.mulf %154, %164 : vector<8x128xf32>
    %167 = arith.addf %165, %166 : vector<8x128xf32>
    %168 = math.tanh %167 : vector<8x128xf32>
    %cst_42 = arith.constant 1.000000e+00 : f32
    %169 = vector.broadcast %cst_42 : f32 to vector<8x128xf32>
    %170 = arith.subf %169, %162 : vector<8x128xf32>
    %171 = arith.mulf %170, %168 : vector<8x128xf32>
    %172 = arith.mulf %162, %140 : vector<8x128xf32>
    %173 = arith.addf %171, %172 : vector<8x128xf32>
    %c5_i32 = arith.constant 5 : i32
    %174 = arith.index_cast %c5_i32 : i32 to index
    %c0_43 = arith.constant 0 : index
    %c0_44 = arith.constant 0 : index
    %175 = vector.load %arg2[%174, %c0_43, %c0_44] : memref<8x8x384xbf16, #tpu.memory_space<vmem>>, vector<1x8x384xbf16>
    %176 = vector.shape_cast %175 : vector<1x8x384xbf16> to vector<8x384xbf16>
    %177 = arith.extf %176 : vector<8x384xbf16> to vector<8x384xf32>
    %178 = arith.truncf %173 : vector<8x128xf32> to vector<8x128xbf16>
    %cst_45 = arith.constant dense<0.000000e+00> : vector<8x256xf32>
    %179 = tpu.matmul %178, %3, %cst_45 {dimension_numbers = #tpu.dot_dimension_numbers<[1], [0], [0], [1], [0, 0, 1, 1], [], []>} : vector<8x128xbf16>, vector<128x256xbf16>, vector<8x256xf32> -> vector<8x256xf32>
    %180 = vector.extract_strided_slice %177 {offsets = [0, 0], sizes = [8, 128], strides = [1, 1]} : vector<8x384xf32> to vector<8x128xf32>
    %181 = vector.extract_strided_slice %179 {offsets = [0, 0], sizes = [8, 128], strides = [1, 1]} : vector<8x256xf32> to vector<8x128xf32>
    %182 = arith.addf %180, %181 : vector<8x128xf32>
    %183 = arith.negf %182 : vector<8x128xf32>
    %184 = math.exp %183 : vector<8x128xf32>
    %cst_46 = arith.constant 1.000000e+00 : f32
    %185 = vector.broadcast %cst_46 : f32 to vector<8x128xf32>
    %186 = arith.addf %185, %184 : vector<8x128xf32>
    %187 = arith.divf %185, %186 : vector<8x128xf32>
    %188 = vector.extract_strided_slice %177 {offsets = [0, 128], sizes = [8, 128], strides = [1, 1]} : vector<8x384xf32> to vector<8x128xf32>
    %189 = vector.extract_strided_slice %179 {offsets = [0, 128], sizes = [8, 128], strides = [1, 1]} : vector<8x256xf32> to vector<8x128xf32>
    %190 = arith.addf %188, %189 : vector<8x128xf32>
    %191 = arith.negf %190 : vector<8x128xf32>
    %192 = math.exp %191 : vector<8x128xf32>
    %cst_47 = arith.constant 1.000000e+00 : f32
    %193 = vector.broadcast %cst_47 : f32 to vector<8x128xf32>
    %194 = arith.addf %193, %192 : vector<8x128xf32>
    %195 = arith.divf %193, %194 : vector<8x128xf32>
    %cst_48 = arith.constant dense<0.000000e+00> : vector<8x128xf32>
    %196 = tpu.matmul %178, %4, %cst_48 {dimension_numbers = #tpu.dot_dimension_numbers<[1], [0], [0], [1], [0, 0, 1, 1], [], []>} : vector<8x128xbf16>, vector<128x128xbf16>, vector<8x128xf32> -> vector<8x128xf32>
    %197 = arith.addf %196, %7 : vector<8x128xf32>
    %198 = vector.extract_strided_slice %177 {offsets = [0, 256], sizes = [8, 128], strides = [1, 1]} : vector<8x384xf32> to vector<8x128xf32>
    %199 = arith.mulf %187, %197 : vector<8x128xf32>
    %200 = arith.addf %198, %199 : vector<8x128xf32>
    %201 = math.tanh %200 : vector<8x128xf32>
    %cst_49 = arith.constant 1.000000e+00 : f32
    %202 = vector.broadcast %cst_49 : f32 to vector<8x128xf32>
    %203 = arith.subf %202, %195 : vector<8x128xf32>
    %204 = arith.mulf %203, %201 : vector<8x128xf32>
    %205 = arith.mulf %195, %173 : vector<8x128xf32>
    %206 = arith.addf %204, %205 : vector<8x128xf32>
    %c6_i32 = arith.constant 6 : i32
    %207 = arith.index_cast %c6_i32 : i32 to index
    %c0_50 = arith.constant 0 : index
    %c0_51 = arith.constant 0 : index
    %208 = vector.load %arg2[%207, %c0_50, %c0_51] : memref<8x8x384xbf16, #tpu.memory_space<vmem>>, vector<1x8x384xbf16>
    %209 = vector.shape_cast %208 : vector<1x8x384xbf16> to vector<8x384xbf16>
    %210 = arith.extf %209 : vector<8x384xbf16> to vector<8x384xf32>
    %211 = arith.truncf %206 : vector<8x128xf32> to vector<8x128xbf16>
    %cst_52 = arith.constant dense<0.000000e+00> : vector<8x256xf32>
    %212 = tpu.matmul %211, %3, %cst_52 {dimension_numbers = #tpu.dot_dimension_numbers<[1], [0], [0], [1], [0, 0, 1, 1], [], []>} : vector<8x128xbf16>, vector<128x256xbf16>, vector<8x256xf32> -> vector<8x256xf32>
    %213 = vector.extract_strided_slice %210 {offsets = [0, 0], sizes = [8, 128], strides = [1, 1]} : vector<8x384xf32> to vector<8x128xf32>
    %214 = vector.extract_strided_slice %212 {offsets = [0, 0], sizes = [8, 128], strides = [1, 1]} : vector<8x256xf32> to vector<8x128xf32>
    %215 = arith.addf %213, %214 : vector<8x128xf32>
    %216 = arith.negf %215 : vector<8x128xf32>
    %217 = math.exp %216 : vector<8x128xf32>
    %cst_53 = arith.constant 1.000000e+00 : f32
    %218 = vector.broadcast %cst_53 : f32 to vector<8x128xf32>
    %219 = arith.addf %218, %217 : vector<8x128xf32>
    %220 = arith.divf %218, %219 : vector<8x128xf32>
    %221 = vector.extract_strided_slice %210 {offsets = [0, 128], sizes = [8, 128], strides = [1, 1]} : vector<8x384xf32> to vector<8x128xf32>
    %222 = vector.extract_strided_slice %212 {offsets = [0, 128], sizes = [8, 128], strides = [1, 1]} : vector<8x256xf32> to vector<8x128xf32>
    %223 = arith.addf %221, %222 : vector<8x128xf32>
    %224 = arith.negf %223 : vector<8x128xf32>
    %225 = math.exp %224 : vector<8x128xf32>
    %cst_54 = arith.constant 1.000000e+00 : f32
    %226 = vector.broadcast %cst_54 : f32 to vector<8x128xf32>
    %227 = arith.addf %226, %225 : vector<8x128xf32>
    %228 = arith.divf %226, %227 : vector<8x128xf32>
    %cst_55 = arith.constant dense<0.000000e+00> : vector<8x128xf32>
    %229 = tpu.matmul %211, %4, %cst_55 {dimension_numbers = #tpu.dot_dimension_numbers<[1], [0], [0], [1], [0, 0, 1, 1], [], []>} : vector<8x128xbf16>, vector<128x128xbf16>, vector<8x128xf32> -> vector<8x128xf32>
    %230 = arith.addf %229, %7 : vector<8x128xf32>
    %231 = vector.extract_strided_slice %210 {offsets = [0, 256], sizes = [8, 128], strides = [1, 1]} : vector<8x384xf32> to vector<8x128xf32>
    %232 = arith.mulf %220, %230 : vector<8x128xf32>
    %233 = arith.addf %231, %232 : vector<8x128xf32>
    %234 = math.tanh %233 : vector<8x128xf32>
    %cst_56 = arith.constant 1.000000e+00 : f32
    %235 = vector.broadcast %cst_56 : f32 to vector<8x128xf32>
    %236 = arith.subf %235, %228 : vector<8x128xf32>
    %237 = arith.mulf %236, %234 : vector<8x128xf32>
    %238 = arith.mulf %228, %206 : vector<8x128xf32>
    %239 = arith.addf %237, %238 : vector<8x128xf32>
    %c7_i32 = arith.constant 7 : i32
    %240 = arith.index_cast %c7_i32 : i32 to index
    %c0_57 = arith.constant 0 : index
    %c0_58 = arith.constant 0 : index
    %241 = vector.load %arg2[%240, %c0_57, %c0_58] : memref<8x8x384xbf16, #tpu.memory_space<vmem>>, vector<1x8x384xbf16>
    %242 = vector.shape_cast %241 : vector<1x8x384xbf16> to vector<8x384xbf16>
    %243 = arith.extf %242 : vector<8x384xbf16> to vector<8x384xf32>
    %244 = arith.truncf %239 : vector<8x128xf32> to vector<8x128xbf16>
    %cst_59 = arith.constant dense<0.000000e+00> : vector<8x256xf32>
    %245 = tpu.matmul %244, %3, %cst_59 {dimension_numbers = #tpu.dot_dimension_numbers<[1], [0], [0], [1], [0, 0, 1, 1], [], []>} : vector<8x128xbf16>, vector<128x256xbf16>, vector<8x256xf32> -> vector<8x256xf32>
    %246 = vector.extract_strided_slice %243 {offsets = [0, 0], sizes = [8, 128], strides = [1, 1]} : vector<8x384xf32> to vector<8x128xf32>
    %247 = vector.extract_strided_slice %245 {offsets = [0, 0], sizes = [8, 128], strides = [1, 1]} : vector<8x256xf32> to vector<8x128xf32>
    %248 = arith.addf %246, %247 : vector<8x128xf32>
    %249 = arith.negf %248 : vector<8x128xf32>
    %250 = math.exp %249 : vector<8x128xf32>
    %cst_60 = arith.constant 1.000000e+00 : f32
    %251 = vector.broadcast %cst_60 : f32 to vector<8x128xf32>
    %252 = arith.addf %251, %250 : vector<8x128xf32>
    %253 = arith.divf %251, %252 : vector<8x128xf32>
    %254 = vector.extract_strided_slice %243 {offsets = [0, 128], sizes = [8, 128], strides = [1, 1]} : vector<8x384xf32> to vector<8x128xf32>
    %255 = vector.extract_strided_slice %245 {offsets = [0, 128], sizes = [8, 128], strides = [1, 1]} : vector<8x256xf32> to vector<8x128xf32>
    %256 = arith.addf %254, %255 : vector<8x128xf32>
    %257 = arith.negf %256 : vector<8x128xf32>
    %258 = math.exp %257 : vector<8x128xf32>
    %cst_61 = arith.constant 1.000000e+00 : f32
    %259 = vector.broadcast %cst_61 : f32 to vector<8x128xf32>
    %260 = arith.addf %259, %258 : vector<8x128xf32>
    %261 = arith.divf %259, %260 : vector<8x128xf32>
    %cst_62 = arith.constant dense<0.000000e+00> : vector<8x128xf32>
    %262 = tpu.matmul %244, %4, %cst_62 {dimension_numbers = #tpu.dot_dimension_numbers<[1], [0], [0], [1], [0, 0, 1, 1], [], []>} : vector<8x128xbf16>, vector<128x128xbf16>, vector<8x128xf32> -> vector<8x128xf32>
    %263 = arith.addf %262, %7 : vector<8x128xf32>
    %264 = vector.extract_strided_slice %243 {offsets = [0, 256], sizes = [8, 128], strides = [1, 1]} : vector<8x384xf32> to vector<8x128xf32>
    %265 = arith.mulf %253, %263 : vector<8x128xf32>
    %266 = arith.addf %264, %265 : vector<8x128xf32>
    %267 = math.tanh %266 : vector<8x128xf32>
    %cst_63 = arith.constant 1.000000e+00 : f32
    %268 = vector.broadcast %cst_63 : f32 to vector<8x128xf32>
    %269 = arith.subf %268, %261 : vector<8x128xf32>
    %270 = arith.mulf %269, %267 : vector<8x128xf32>
    %271 = arith.mulf %261, %239 : vector<8x128xf32>
    %272 = arith.addf %270, %271 : vector<8x128xf32>
    %c8_i32 = arith.constant 8 : i32
    %c0_64 = arith.constant 0 : index
    %c0_65 = arith.constant 0 : index
    %273 = vector.load %arg7[%c0_64, %c0_65] : memref<8x128xf32, #tpu.memory_space<vmem>>, vector<8x128xf32>
    tpu.vector_store %arg7[%c0_64, %c0_65], %272 {strides = array<i32>} : memref<8x128xf32, #tpu.memory_space<vmem>>, vector<8x128xf32>,
    %c0_i32_66 = arith.constant 0 : i32
    %274 = arith.cmpi eq, %arg1, %c0_i32_66 : i32
    %275 = arith.extui %274 : i1 to i32
    %c0_i32_67 = arith.constant 0 : i32
    %276 = arith.cmpi ne, %275, %c0_i32_67 : i32
    scf.if %276 {
      %c0_68 = arith.constant 0 : index
      %c0_69 = arith.constant 0 : index
      %277 = vector.load %arg7[%c0_68, %c0_69] : memref<8x128xf32, #tpu.memory_space<vmem>>, vector<8x128xf32>
      %c0_70 = arith.constant 0 : index
      %c0_71 = arith.constant 0 : index
      %278 = vector.load %arg6[%c0_70, %c0_71] : memref<8x128xf32, #tpu.memory_space<vmem>>, vector<8x128xf32>
      tpu.vector_store %arg6[%c0_70, %c0_71], %277 {strides = array<i32>} : memref<8x128xf32, #tpu.memory_space<vmem>>, vector<8x128xf32>,
    } else {
    }
    return
  }
  func.func @transform_0(%arg0: i32, %arg1: i32) -> (i32, i32, i32) {
    %c0_i32 = arith.constant 0 : i32
    %c0_i32_0 = arith.constant 0 : i32
    return %arg1, %arg0, %c0_i32 : i32, i32, i32
  }
  func.func @transform_1(%arg0: i32, %arg1: i32) -> (i32, i32) {
    %c0_i32 = arith.constant 0 : i32
    %c0_i32_0 = arith.constant 0 : i32
    %c0_i32_1 = arith.constant 0 : i32
    return %c0_i32, %c0_i32_0 : i32, i32
  }
  func.func @transform_2(%arg0: i32, %arg1: i32) -> (i32, i32) {
    %c0_i32 = arith.constant 0 : i32
    %c0_i32_0 = arith.constant 0 : i32
    %c0_i32_1 = arith.constant 0 : i32
    return %c0_i32, %c0_i32_0 : i32, i32
  }
  func.func @transform_3(%arg0: i32, %arg1: i32) -> (i32, i32) {
    %c0_i32 = arith.constant 0 : i32
    %c0_i32_0 = arith.constant 0 : i32
    %c0_i32_1 = arith.constant 0 : i32
    return %c0_i32, %c0_i32_0 : i32, i32
  }
  func.func @transform_4(%arg0: i32, %arg1: i32) -> (i32, i32) {
    %c0_i32 = arith.constant 0 : i32
    %c0_i32_0 = arith.constant 0 : i32
    return %arg0, %c0_i32 : i32, i32
  }
}

</mosaic_0001>

<bundles_post_ra>
// kernel: gru_forward.1
= control target key start
LH: loop header
LB: loop body
LE: loop exit
PB: predicated region body
PF: predicated region fallthrough
CT: control target
= control target key end

     0   :  { %v1482_v1 = vmov 0.0   ;;  %v1483_v2 = vmov 0   ;;  %vm1484_vm0 = vmmov 0   ;;  %v1485_v25 = vmov 0.0|0.0   ;;  %s2019_s1 = inlined_call_operand.vmem [shape: bf16[128,256], index: 1, kind: input, shape index: {}]   ;;  %s2020_s2 = inlined_call_operand.vmem [shape: bf16[128,128], index: 2, kind: input, shape index: {}]   ;;  %s2021_s0 = inlined_call_operand.vmem [shape: bf16[8,8,384], index: 0, kind: input, shape index: {}]   ;;  %s2022_s3 = inlined_call_operand.vmem [shape: f32[1,128], index: 3, kind: input, shape index: {}]   ;;  %s2023_s4 = inlined_call_operand.vmem [shape: f32[8,128], index: 4, kind: output, shape index: {}]  }
   0x1   :  { %v1514_v0 = vld [vmem:[%s2019_s1 + $0x4] ss:$8 sps:$4 sm:$0xff]   ;;  %1199 = vmatprep.subr.bf16.mxu1 %v1482_v1  ;;  %181 = vmatprep.mubr.bf16.mxu0 %v1483_v2  ;;  %v1521_v3 = vld [vmem:[%s2019_s1] ss:$8 sps:$4 sm:$0xff]   ;;  %v1529_v4 = vld [vmem:[%s2019_s1 + $0x14] ss:$8 sps:$4 sm:$0xff]  }
   0x2   :  { %1215 = vmatprep.mubr.msk.bf16.mxu1 %vm1484_vm0, %v1482_v1  ;;  %149 = vmatprep.subr.bf16.mxu0 %v1514_v0  ;;  %v1535_v5 = vld [vmem:[%s2019_s1 + $0x10] ss:$8 sps:$4 sm:$0xff]   ;;  %v1541_v6 = vld [vmem:[%s2019_s1 + $0x24] ss:$8 sps:$4 sm:$0xff]   ;;  %v1547_v7 = vld [vmem:[%s2019_s1 + $0x20] ss:$8 sps:$4 sm:$0xff]  }
   0x3   :  { %150 = vmatpush1.bf16.msra.mxu0 %v1521_v3  ;;  %v1553_v8 = vld [vmem:[%s2019_s1 + $0x34] ss:$8 sps:$4 sm:$0xff]   ;;  %v1558_v9 = vld [vmem:[%s2020_s2] sm:$0xff]   ;;  %v1564_v10 = vld [vmem:[%s2019_s1 + $0x30] ss:$8 sps:$4 sm:$0xff]  }
   0x4   :  { %151 = vmatprep.subr.bf16.mxu0 %v1529_v4  ;;  %1200 = vmatpush3.bf16.msra.mxu1 %v1558_v9  ;;  %v1571_v11 = vld [vmem:[%s2019_s1 + $0x44] ss:$8 sps:$4 sm:$0xff]   ;;  %v1582_v13 = vld [vmem:[%s2019_s1 + $0x40] ss:$8 sps:$4 sm:$0xff]   ;;  %v1589_v14 = vld [vmem:[%s2020_s2 + $0x10] sm:$0xff]  }
   0x5   :  { %1201 = vmatprep.subr.bf16.mxu1 %v1482_v1  ;;  %v1577_v12 = vld [vmem:[%s2020_s2 + $0x8] sm:$0xff]   ;;  %v1595_v15 = vld [vmem:[%s2019_s1 + $0x54] ss:$8 sps:$4 sm:$0xff]   ;;  %v1602_v16 = vld [vmem:[%s2019_s1 + $0x50] ss:$8 sps:$4 sm:$0xff]  }
   0x6   :  { %v1608_v17 = vld [vmem:[%s2020_s2 + $0x18] sm:$0xff]   ;;  %v1614_v18 = vld [vmem:[%s2019_s1 + $0x64] ss:$8 sps:$4 sm:$0xff]   ;;  %v1621_v19 = vld [vmem:[%s2019_s1 + $0x60] ss:$8 sps:$4 sm:$0xff]  }
   0x7   :  { %152 = vmatpush1.bf16.msra.mxu0 %v1535_v5  ;;  %v1627_v20 = vld [vmem:[%s2020_s2 + $0x20] sm:$0xff]   ;;  %v1633_v21 = vld [vmem:[%s2019_s1 + $0x74] ss:$8 sps:$4 sm:$0xff]   ;;  %v1640_v22 = vld [vmem:[%s2019_s1 + $0x70] ss:$8 sps:$4 sm:$0xff]  }
   0x8   :  { %153 = vmatprep.subr.bf16.mxu0 %v1541_v6  ;;  %1202 = vmatpush3.bf16.msra.mxu1 %v1577_v12  ;;  %v1646_v23 = vld [vmem:[%s2020_s2 + $0x28] sm:$0xff]   ;;  %v1655_v24 = vld [vmem:[%s2020_s2 + $0x30] sm:$0xff]   ;;  %v1663_v26 = vld [vmem:[%s2020_s2 + $0x38] sm:$0xff]  }
   0x9   :  { %1203 = vmatprep.subr.bf16.mxu1 %v1482_v1  ;;  %v63_v27 = vld [vmem:[%s2021_s0] sm:$0xff]  ;;  %v1714_v46 = vld [vmem:[%s2021_s0 + $0x8] ss:$12 sps:$4 sm:$0xff]   ;;  %v1099_v60 = vld [vmem:[%s2021_s0 + $0xc] sm:$0xff] }
   0xa   :  { %v65_v28 = vunpack.c.l.bf16 %v63_v27  ;;  %v66_v30 = vunpack.c.h.bf16 %v63_v27  ;;  %v1709_v45 = vld [vmem:[%s2022_s3] ss:$0 sm:$0xff]  ;;  %v67_v49 = vunpack.c.l.bf16 %v1714_v46  ;;  %v302_v61 = vunpack.c.l.bf16 %v1099_v60 }
   0xb   :  { %154 = vmatpush1.bf16.msra.mxu0 %v1547_v7 }
   0xc   :  { %155 = vmatprep.subr.bf16.mxu0 %v1553_v8  ;;  %1204 = vmatpush3.bf16.msra.mxu1 %v1589_v14 }
   0xd   :  { %1205 = vmatprep.subr.bf16.mxu1 %v1482_v1 }
   0xf   :  { %156 = vmatpush1.bf16.msra.mxu0 %v1564_v10 }
  0x10   :  { %157 = vmatprep.subr.bf16.mxu0 %v1571_v11  ;;  %1206 = vmatpush3.bf16.msra.mxu1 %v1608_v17 }
  0x11   :  { %1207 = vmatprep.subr.bf16.mxu1 %v1482_v1 }
  0x13   :  { %158 = vmatpush1.bf16.msra.mxu0 %v1582_v13 }
  0x14   :  { %159 = vmatprep.subr.bf16.mxu0 %v1595_v15  ;;  %1208 = vmatpush3.bf16.msra.mxu1 %v1627_v20 }
  0x15   :  { %1209 = vmatprep.subr.bf16.mxu1 %v1482_v1 }
  0x17   :  { %160 = vmatpush1.bf16.msra.mxu0 %v1602_v16 }
  0x18   :  { %161 = vmatprep.subr.bf16.mxu0 %v1614_v18  ;;  %1210 = vmatpush3.bf16.msra.mxu1 %v1646_v23 }
  0x19   :  { %1211 = vmatprep.subr.bf16.mxu1 %v1482_v1 }
  0x1b   :  { %162 = vmatpush1.bf16.msra.mxu0 %v1621_v19 }
  0x1c   :  { %163 = vmatprep.subr.bf16.mxu0 %v1633_v21  ;;  %1212 = vmatpush3.bf16.msra.mxu1 %v1655_v24 }
  0x1d   :  { %1213 = vmatprep.subr.bf16.mxu1 %v1482_v1 }
  0x1f   :  { %164 = vmatpush1.bf16.msra.mxu0 %v1640_v22 }
  0x20   :  { %306 = vmatprep.subr.bf16.mxu0 %v1514_v0  ;;  %1214 = vmatpush3.bf16.msra.mxu1 %v1663_v26 }
  0x21   :  { %1219 = vmatprep.subr.bf16.mxu1 %v1482_v1 }
  0x22   :  { %182 = vmatmul.mubr.bf16.vlgmr.msra.gmra.mrb[0].mxu0 %v1485_v25 }
  0x23   :  { %307 = vmatpush1.bf16.msra.mxu0 %v1521_v3  ;;  %338 = vmatprep.mubr.bf16.mxu0 %v1483_v2 }
  0x24   :  { %308 = vmatprep.subr.bf16.mxu0 %v1529_v4  ;;  %1216 = vmatmul.mubr.bf16.vlgmr.msra.gmra.mrb[0].mxu1 %v1485_v25  ;;  %v303_v25 = vunpack.c.h.bf16 %v1099_v60 }
  0x25   :  { %1220 = vmatpush3.bf16.msra.mxu1 %v1558_v9  ;;  %1235 = vmatprep.mubr.msk.bf16.mxu1 %vm1484_vm0, %v1482_v1 }
  0x26   :  { %1221 = vmatprep.subr.bf16.mxu1 %v1482_v1 }
  0x27   :  { %309 = vmatpush1.bf16.msra.mxu0 %v1535_v5 }
  0x28   :  { %310 = vmatprep.subr.bf16.mxu0 %v1541_v6 }
  0x29   :  { %1222 = vmatpush3.bf16.msra.mxu1 %v1577_v12 }
  0x2a   :  { %1223 = vmatprep.subr.bf16.mxu1 %v1482_v1 }
  0x2b   :  { %311 = vmatpush1.bf16.msra.mxu0 %v1547_v7 }
  0x2c   :  { %312 = vmatprep.subr.bf16.mxu0 %v1553_v8 }
  0x2d   :  { %1224 = vmatpush3.bf16.msra.mxu1 %v1589_v14 }
  0x2e   :  { %1225 = vmatprep.subr.bf16.mxu1 %v1482_v1 }
  0x2f   :  { %313 = vmatpush1.bf16.msra.mxu0 %v1564_v10 }
  0x30   :  { %314 = vmatprep.subr.bf16.mxu0 %v1571_v11 }
  0x31   :  { %1226 = vmatpush3.bf16.msra.mxu1 %v1608_v17 }
  0x32   :  { %1227 = vmatprep.subr.bf16.mxu1 %v1482_v1 }
  0x33   :  { %315 = vmatpush1.bf16.msra.mxu0 %v1582_v13 }
  0x34   :  { %316 = vmatprep.subr.bf16.mxu0 %v1595_v15 }
  0x35   :  { %1228 = vmatpush3.bf16.msra.mxu1 %v1627_v20 }
  0x36   :  { %1229 = vmatprep.subr.bf16.mxu1 %v1482_v1 }
  0x37   :  { %317 = vmatpush1.bf16.msra.mxu0 %v1602_v16 }
  0x38   :  { %318 = vmatprep.subr.bf16.mxu0 %v1614_v18 }
  0x39   :  { %1230 = vmatpush3.bf16.msra.mxu1 %v1646_v23 }
  0x3a   :  { %1231 = vmatprep.subr.bf16.mxu1 %v1482_v1 }
  0x3b   :  { %319 = vmatpush1.bf16.msra.mxu0 %v1621_v19 }
  0x3c   :  { %320 = vmatprep.subr.bf16.mxu0 %v1633_v21 }
  0x3d   :  { %1232 = vmatpush3.bf16.msra.mxu1 %v1655_v24 }
  0x3e   :  { %1233 = vmatprep.subr.bf16.mxu1 %v1482_v1 }
  0x3f   :  { %321 = vmatpush1.bf16.msra.mxu0 %v1640_v22 }
  0x40   :  { %415 = vmatprep.subr.bf16.mxu0 %v1514_v0 }
  0x41   :  { %1234 = vmatpush3.bf16.msra.mxu1 %v1663_v26 }
  0x42   :  { %1239 = vmatprep.subr.bf16.mxu1 %v1482_v1 }
  0xf5   :  { %v183_v29 = vpop.f32.mrb[0].mxu0 }
  0xf6   :  { %v190_v31 = vadd.f32 %v183_v29, %v65_v28  ;;  %v185_v32 = vpop.f32.mrb[1].mxu0 }
  0xf7   :  { %v187_v33 = vpop.f32.mrb[2].mxu0  ;;  %v197_v36 = vadd.f32 %v185_v32, %v66_v30  ;;  %v286_v38 = vpop.f32.mrb[0].mxu1 }
  0xf8   :  { %v1089_v34 = vmul.f32 -1.442695, %v190_v31  ;;  %v188_v35 = vpop.f32.mrb[3].mxu0  ;;  %v1217_v39 = vpop.f32.mrb[1].mxu1  ;;  %v287_v48 = vadd.f32 %v1709_v45, %v286_v38 }
  0xf9   :  { %v1090_v37 = vmul.f32 -1.442695, %v197_v36  ;;  %v289_v40 = vpop.f32.mrb[2].mxu1 }
  0xfa   :  { %1395 = vpow2.f32 %v1089_v34  ;;  %v1218_v41 = vpop.f32.mrb[3].mxu1 }
  0xfb   :  { %1397 = vpow2.f32 %v1090_v37  ;;  %v304_v41 = vunpack.c.h.bf16 %v1714_v46  ;;  %v1103_v46 = vld [vmem:[%s2021_s0 + $0x18] sm:$0xff] }
 0x104   :  { %v1396_v42 = vpop.eup %1395 }
 0x105   :  { %v194_v43 = vadd.f32 1.0, %v1396_v42  ;;  %v1398_v44 = vpop.eup %1397 }
 0x106   :  { %v201_v47 = vadd.f32 1.0, %v1398_v44 }
 0x107   :  { %1399 = vrcp.f32 %v194_v43 }
 0x108   :  { %1401 = vrcp.f32 %v201_v47 }
 0x111   :  { %v1400_v50 = vpop.eup %1399 }
 0x112   :  { %v292_v51 = vmul.f32 %v1400_v50, %v287_v48  ;;  %v1402_v53 = vpop.eup %1401 }
 0x113   :  { %v295_v54 = vsub.f32 1.0, %v1402_v53  ;;  %v297_v57 = vmul.f32 0.0, %v1402_v53 }
 0x114   :  { %v293_v52 = vadd.f32 %v292_v51, %v67_v49 }
 0x116   :  { %1403 = vtanh.f32 %v293_v52 }
 0x120   :  { %v1404_v55 = vpop.eup %1403 }
 0x121   :  { %v296_v56 = vmul.f32 %v1404_v55, %v295_v54  ;;  %v411_v55 = vunpack.c.l.bf16 %v1103_v46 }
 0x123   :  { %v1718_v58 = vadd.f32 %v297_v57, %v296_v56 }
 0x125   :  { %v305_v59 = vpack.c.bf16 %v1718_v58, %v1718_v58 }
 0x127   :  { %339 = vmatmul.mubr.bf16.vlgmr.msra.gmra.mrb[4].mxu0 %v305_v59  ;;  %1236 = vmatmul.mubr.bf16.vlgmr.msra.gmra.mrb[4].mxu1 %v305_v59 }
 0x128   :  { %416 = vmatpush1.bf16.msra.mxu0 %v1521_v3  ;;  %1240 = vmatpush3.bf16.msra.mxu1 %v1558_v9 }
 0x129   :  { %417 = vmatprep.subr.bf16.mxu0 %v1529_v4  ;;  %1241 = vmatprep.subr.bf16.mxu1 %v1482_v1 }
 0x12a   :  { %447 = vmatprep.mubr.bf16.mxu0 %v1483_v2  ;;  %1255 = vmatprep.mubr.msk.bf16.mxu1 %vm1484_vm0, %v1482_v1 }
 0x12c   :  { %418 = vmatpush1.bf16.msra.mxu0 %v1535_v5  ;;  %1242 = vmatpush3.bf16.msra.mxu1 %v1577_v12 }
 0x12d   :  { %419 = vmatprep.subr.bf16.mxu0 %v1541_v6  ;;  %1243 = vmatprep.subr.bf16.mxu1 %v1482_v1 }
 0x130   :  { %420 = vmatpush1.bf16.msra.mxu0 %v1547_v7  ;;  %1244 = vmatpush3.bf16.msra.mxu1 %v1589_v14 }
 0x131   :  { %421 = vmatprep.subr.bf16.mxu0 %v1553_v8  ;;  %1245 = vmatprep.subr.bf16.mxu1 %v1482_v1 }
 0x134   :  { %422 = vmatpush1.bf16.msra.mxu0 %v1564_v10  ;;  %1246 = vmatpush3.bf16.msra.mxu1 %v1608_v17 }
 0x135   :  { %423 = vmatprep.subr.bf16.mxu0 %v1571_v11  ;;  %1247 = vmatprep.subr.bf16.mxu1 %v1482_v1 }
 0x138   :  { %424 = vmatpush1.bf16.msra.mxu0 %v1582_v13  ;;  %1248 = vmatpush3.bf16.msra.mxu1 %v1627_v20 }
 0x139   :  { %425 = vmatprep.subr.bf16.mxu0 %v1595_v15  ;;  %1249 = vmatprep.subr.bf16.mxu1 %v1482_v1 }
 0x13c   :  { %426 = vmatpush1.bf16.msra.mxu0 %v1602_v16  ;;  %1250 = vmatpush3.bf16.msra.mxu1 %v1646_v23 }
 0x13d   :  { %427 = vmatprep.subr.bf16.mxu0 %v1614_v18  ;;  %1251 = vmatprep.subr.bf16.mxu1 %v1482_v1 }
 0x140   :  { %428 = vmatpush1.bf16.msra.mxu0 %v1621_v19  ;;  %1252 = vmatpush3.bf16.msra.mxu1 %v1655_v24 }
 0x141   :  { %429 = vmatprep.subr.bf16.mxu0 %v1633_v21  ;;  %1253 = vmatprep.subr.bf16.mxu1 %v1482_v1 }
 0x144   :  { %430 = vmatpush1.bf16.msra.mxu0 %v1640_v22  ;;  %1254 = vmatpush3.bf16.msra.mxu1 %v1663_v26 }
 0x145   :  { %524 = vmatprep.subr.bf16.mxu0 %v1514_v0  ;;  %1259 = vmatprep.subr.bf16.mxu1 %v1482_v1 }
 0x1fa   :  { %v340_v62 = vpop.f32.mrb[4].mxu0  ;;  %v395_v63 = vpop.f32.mrb[4].mxu1 }
 0x1fb   :  { %v347_v27 = vadd.f32 %v340_v62, %v302_v61  ;;  %v342_v28 = vpop.f32.mrb[5].mxu0  ;;  %v1237_v29 = vpop.f32.mrb[5].mxu1  ;;  %v396_v42 = vadd.f32 %v1709_v45, %v395_v63 }
 0x1fc   :  { %v344_v30 = vpop.f32.mrb[6].mxu0  ;;  %v398_v31 = vpop.f32.mrb[6].mxu1  ;;  %v354_v35 = vadd.f32 %v342_v28, %v303_v25 }
 0x1fd   :  { %v1101_v32 = vmul.f32 -1.442695, %v347_v27  ;;  %v345_v33 = vpop.f32.mrb[7].mxu0  ;;  %v1238_v34 = vpop.f32.mrb[7].mxu1 }
 0x1fe   :  { %v1102_v36 = vmul.f32 -1.442695, %v354_v35  ;;  %v1808_v34 = vld [vmem:[%s2021_s0 + $0x20] ss:$12 sps:$4 sm:$0xff]  }
 0x1ff   :  { %1405 = vpow2.f32 %v1101_v32 }
 0x200   :  { %1407 = vpow2.f32 %v1102_v36  ;;  %v413_v36 = vunpack.c.l.bf16 %v1808_v34 }
 0x209   :  { %v1406_v37 = vpop.eup %1405 }
 0x20a   :  { %v351_v38 = vadd.f32 1.0, %v1406_v37  ;;  %v1408_v39 = vpop.eup %1407 }
 0x20b   :  { %v358_v40 = vadd.f32 1.0, %v1408_v39 }
 0x20c   :  { %1409 = vrcp.f32 %v351_v38 }
 0x20d   :  { %1411 = vrcp.f32 %v358_v40 }
 0x216   :  { %v1410_v43 = vpop.eup %1409 }
 0x217   :  { %v401_v44 = vmul.f32 %v1410_v43, %v396_v42  ;;  %v1412_v48 = vpop.eup %1411 }
 0x218   :  { %v404_v49 = vsub.f32 1.0, %v1412_v48  ;;  %v406_v52 = vmul.f32 %v1412_v48, %v1718_v58  ;;  %v412_v58 = vunpack.c.h.bf16 %v1103_v46 }
 0x219   :  { %v402_v47 = vadd.f32 %v401_v44, %v304_v41 }
 0x21b   :  { %1413 = vtanh.f32 %v402_v47 }
 0x225   :  { %v1414_v50 = vpop.eup %1413 }
 0x226   :  { %v405_v51 = vmul.f32 %v1414_v50, %v404_v49  ;;  %v1107_v50 = vld [vmem:[%s2021_s0 + $0x24] sm:$0xff] }
 0x228   :  { %v1763_v53 = vadd.f32 %v406_v52, %v405_v51  ;;  %v520_v51 = vunpack.c.l.bf16 %v1107_v50 }
 0x22a   :  { %v414_v54 = vpack.c.bf16 %v1763_v53, %v1763_v53 }
 0x22c   :  { %448 = vmatmul.mubr.bf16.vlgmr.msra.gmra.mrb[8].mxu0 %v414_v54  ;;  %1256 = vmatmul.mubr.bf16.vlgmr.msra.gmra.mrb[8].mxu1 %v414_v54  ;;  %v521_v54 = vunpack.c.h.bf16 %v1107_v50 }
 0x22d   :  { %525 = vmatpush1.bf16.msra.mxu0 %v1521_v3  ;;  %1260 = vmatpush3.bf16.msra.mxu1 %v1558_v9 }
 0x22e   :  { %526 = vmatprep.subr.bf16.mxu0 %v1529_v4  ;;  %1261 = vmatprep.subr.bf16.mxu1 %v1482_v1 }
 0x22f   :  { %556 = vmatprep.mubr.bf16.mxu0 %v1483_v2  ;;  %1275 = vmatprep.mubr.msk.bf16.mxu1 %vm1484_vm0, %v1482_v1 }
 0x231   :  { %527 = vmatpush1.bf16.msra.mxu0 %v1535_v5  ;;  %1262 = vmatpush3.bf16.msra.mxu1 %v1577_v12 }
 0x232   :  { %528 = vmatprep.subr.bf16.mxu0 %v1541_v6  ;;  %1263 = vmatprep.subr.bf16.mxu1 %v1482_v1 }
 0x235   :  { %529 = vmatpush1.bf16.msra.mxu0 %v1547_v7  ;;  %1264 = vmatpush3.bf16.msra.mxu1 %v1589_v14 }
 0x236   :  { %530 = vmatprep.subr.bf16.mxu0 %v1553_v8  ;;  %1265 = vmatprep.subr.bf16.mxu1 %v1482_v1 }
 0x239   :  { %531 = vmatpush1.bf16.msra.mxu0 %v1564_v10  ;;  %1266 = vmatpush3.bf16.msra.mxu1 %v1608_v17 }
 0x23a   :  { %532 = vmatprep.subr.bf16.mxu0 %v1571_v11  ;;  %1267 = vmatprep.subr.bf16.mxu1 %v1482_v1 }
 0x23d   :  { %533 = vmatpush1.bf16.msra.mxu0 %v1582_v13  ;;  %1268 = vmatpush3.bf16.msra.mxu1 %v1627_v20 }
 0x23e   :  { %534 = vmatprep.subr.bf16.mxu0 %v1595_v15  ;;  %1269 = vmatprep.subr.bf16.mxu1 %v1482_v1 }
 0x241   :  { %535 = vmatpush1.bf16.msra.mxu0 %v1602_v16  ;;  %1270 = vmatpush3.bf16.msra.mxu1 %v1646_v23 }
 0x242   :  { %536 = vmatprep.subr.bf16.mxu0 %v1614_v18  ;;  %1271 = vmatprep.subr.bf16.mxu1 %v1482_v1 }
 0x245   :  { %537 = vmatpush1.bf16.msra.mxu0 %v1621_v19  ;;  %1272 = vmatpush3.bf16.msra.mxu1 %v1655_v24 }
 0x246   :  { %538 = vmatprep.subr.bf16.mxu0 %v1633_v21  ;;  %1273 = vmatprep.subr.bf16.mxu1 %v1482_v1 }
 0x249   :  { %539 = vmatpush1.bf16.msra.mxu0 %v1640_v22  ;;  %1274 = vmatpush3.bf16.msra.mxu1 %v1663_v26 }
 0x24a   :  { %633 = vmatprep.subr.bf16.mxu0 %v1514_v0  ;;  %1279 = vmatprep.subr.bf16.mxu1 %v1482_v1 }
 0x2ff   :  { %v449_v56 = vpop.f32.mrb[8].mxu0  ;;  %v504_v57 = vpop.f32.mrb[8].mxu1 }
 0x300   :  { %v456_v59 = vadd.f32 %v449_v56, %v411_v55  ;;  %v451_v60 = vpop.f32.mrb[9].mxu0  ;;  %v1257_v61 = vpop.f32.mrb[9].mxu1  ;;  %v505_v37 = vadd.f32 %v1709_v45, %v504_v57 }
 0x301   :  { %v453_v62 = vpop.f32.mrb[10].mxu0  ;;  %v507_v63 = vpop.f32.mrb[10].mxu1  ;;  %v463_v29 = vadd.f32 %v451_v60, %v412_v58 }
 0x302   :  { %v1105_v25 = vmul.f32 -1.442695, %v456_v59  ;;  %v454_v27 = vpop.f32.mrb[11].mxu0  ;;  %v1258_v28 = vpop.f32.mrb[11].mxu1 }
 0x303   :  { %v1106_v30 = vmul.f32 -1.442695, %v463_v29 }
 0x304   :  { %1415 = vpow2.f32 %v1105_v25 }
 0x305   :  { %1417 = vpow2.f32 %v1106_v30  ;;  %v522_v30 = vunpack.c.h.bf16 %v1808_v34  ;;  %v1111_v34 = vld [vmem:[%s2021_s0 + $0x30] sm:$0xff] }
 0x30e   :  { %v1416_v31 = vpop.eup %1415 }
 0x30f   :  { %v460_v32 = vadd.f32 1.0, %v1416_v31  ;;  %v1418_v33 = vpop.eup %1417 }
 0x310   :  { %v467_v35 = vadd.f32 1.0, %v1418_v33 }
 0x311   :  { %1419 = vrcp.f32 %v460_v32 }
 0x312   :  { %1421 = vrcp.f32 %v467_v35 }
 0x31b   :  { %v1420_v38 = vpop.eup %1419 }
 0x31c   :  { %v510_v39 = vmul.f32 %v1420_v38, %v505_v37  ;;  %v1422_v41 = vpop.eup %1421 }
 0x31d   :  { %v513_v42 = vsub.f32 1.0, %v1422_v41  ;;  %v515_v47 = vmul.f32 %v1422_v41, %v1763_v53 }
 0x31e   :  { %v511_v40 = vadd.f32 %v510_v39, %v413_v36 }
 0x320   :  { %1423 = vtanh.f32 %v511_v40 }
 0x32a   :  { %v1424_v43 = vpop.eup %1423 }
 0x32b   :  { %v514_v44 = vmul.f32 %v1424_v43, %v513_v42  ;;  %v629_v43 = vunpack.c.l.bf16 %v1111_v34 }
 0x32d   :  { %v1813_v48 = vadd.f32 %v515_v47, %v514_v44 }
 0x32f   :  { %v523_v49 = vpack.c.bf16 %v1813_v48, %v1813_v48 }
 0x331   :  { %557 = vmatmul.mubr.bf16.vlgmr.msra.gmra.mrb[12].mxu0 %v523_v49  ;;  %1276 = vmatmul.mubr.bf16.vlgmr.msra.gmra.mrb[12].mxu1 %v523_v49 }
 0x332   :  { %634 = vmatpush1.bf16.msra.mxu0 %v1521_v3  ;;  %1280 = vmatpush3.bf16.msra.mxu1 %v1558_v9 }
 0x333   :  { %635 = vmatprep.subr.bf16.mxu0 %v1529_v4  ;;  %1281 = vmatprep.subr.bf16.mxu1 %v1482_v1 }
 0x334   :  { %665 = vmatprep.mubr.bf16.mxu0 %v1483_v2  ;;  %1295 = vmatprep.mubr.msk.bf16.mxu1 %vm1484_vm0, %v1482_v1 }
 0x336   :  { %636 = vmatpush1.bf16.msra.mxu0 %v1535_v5  ;;  %1282 = vmatpush3.bf16.msra.mxu1 %v1577_v12 }
 0x337   :  { %637 = vmatprep.subr.bf16.mxu0 %v1541_v6  ;;  %1283 = vmatprep.subr.bf16.mxu1 %v1482_v1 }
 0x33a   :  { %638 = vmatpush1.bf16.msra.mxu0 %v1547_v7  ;;  %1284 = vmatpush3.bf16.msra.mxu1 %v1589_v14 }
 0x33b   :  { %639 = vmatprep.subr.bf16.mxu0 %v1553_v8  ;;  %1285 = vmatprep.subr.bf16.mxu1 %v1482_v1 }
 0x33e   :  { %640 = vmatpush1.bf16.msra.mxu0 %v1564_v10  ;;  %1286 = vmatpush3.bf16.msra.mxu1 %v1608_v17 }
 0x33f   :  { %641 = vmatprep.subr.bf16.mxu0 %v1571_v11  ;;  %1287 = vmatprep.subr.bf16.mxu1 %v1482_v1 }
 0x342   :  { %642 = vmatpush1.bf16.msra.mxu0 %v1582_v13  ;;  %1288 = vmatpush3.bf16.msra.mxu1 %v1627_v20 }
 0x343   :  { %643 = vmatprep.subr.bf16.mxu0 %v1595_v15  ;;  %1289 = vmatprep.subr.bf16.mxu1 %v1482_v1 }
 0x346   :  { %644 = vmatpush1.bf16.msra.mxu0 %v1602_v16  ;;  %1290 = vmatpush3.bf16.msra.mxu1 %v1646_v23 }
 0x347   :  { %645 = vmatprep.subr.bf16.mxu0 %v1614_v18  ;;  %1291 = vmatprep.subr.bf16.mxu1 %v1482_v1 }
 0x34a   :  { %646 = vmatpush1.bf16.msra.mxu0 %v1621_v19  ;;  %1292 = vmatpush3.bf16.msra.mxu1 %v1655_v24 }
 0x34b   :  { %647 = vmatprep.subr.bf16.mxu0 %v1633_v21  ;;  %1293 = vmatprep.subr.bf16.mxu1 %v1482_v1 }
 0x34e   :  { %648 = vmatpush1.bf16.msra.mxu0 %v1640_v22  ;;  %1294 = vmatpush3.bf16.msra.mxu1 %v1663_v26 }
 0x34f   :  { %742 = vmatprep.subr.bf16.mxu0 %v1514_v0  ;;  %1299 = vmatprep.subr.bf16.mxu1 %v1482_v1 }
 0x404   :  { %v558_v52 = vpop.f32.mrb[12].mxu0  ;;  %v613_v53 = vpop.f32.mrb[12].mxu1 }
 0x405   :  { %v565_v46 = vadd.f32 %v558_v52, %v520_v51  ;;  %v560_v55 = vpop.f32.mrb[13].mxu0  ;;  %v1277_v56 = vpop.f32.mrb[13].mxu1  ;;  %v614_v31 = vadd.f32 %v1709_v45, %v613_v53 }
 0x406   :  { %v562_v57 = vpop.f32.mrb[14].mxu0  ;;  %v616_v58 = vpop.f32.mrb[14].mxu1  ;;  %v572_v62 = vadd.f32 %v560_v55, %v521_v54 }
 0x407   :  { %v1109_v59 = vmul.f32 -1.442695, %v565_v46  ;;  %v563_v60 = vpop.f32.mrb[15].mxu0  ;;  %v1278_v61 = vpop.f32.mrb[15].mxu1 }
 0x408   :  { %v1110_v63 = vmul.f32 -1.442695, %v572_v62  ;;  %v1903_v61 = vld [vmem:[%s2021_s0 + $0x38] ss:$12 sps:$4 sm:$0xff]  }
 0x409   :  { %1425 = vpow2.f32 %v1109_v59 }
 0x40a   :  { %1427 = vpow2.f32 %v1110_v63  ;;  %v631_v63 = vunpack.c.l.bf16 %v1903_v61 }
 0x413   :  { %v1426_v25 = vpop.eup %1425 }
 0x414   :  { %v569_v27 = vadd.f32 1.0, %v1426_v25  ;;  %v1428_v28 = vpop.eup %1427 }
 0x415   :  { %v576_v29 = vadd.f32 1.0, %v1428_v28 }
 0x416   :  { %1429 = vrcp.f32 %v569_v27 }
 0x417   :  { %1431 = vrcp.f32 %v576_v29 }
 0x420   :  { %v1430_v32 = vpop.eup %1429 }
 0x421   :  { %v619_v33 = vmul.f32 %v1430_v32, %v614_v31  ;;  %v1432_v36 = vpop.eup %1431 }
 0x422   :  { %v622_v37 = vsub.f32 1.0, %v1432_v36  ;;  %v624_v40 = vmul.f32 %v1432_v36, %v1813_v48  ;;  %v630_v48 = vunpack.c.h.bf16 %v1111_v34 }
 0x423   :  { %v620_v35 = vadd.f32 %v619_v33, %v522_v30 }
 0x425   :  { %1433 = vtanh.f32 %v620_v35 }
 0x42f   :  { %v1434_v38 = vpop.eup %1433 }
 0x430   :  { %v623_v39 = vmul.f32 %v1434_v38, %v622_v37 }
 0x432   :  { %v1858_v41 = vadd.f32 %v624_v40, %v623_v39 }
 0x434   :  { %v632_v42 = vpack.c.bf16 %v1858_v41, %v1858_v41 }
 0x436   :  { %666 = vmatmul.mubr.bf16.vlgmr.msra.gmra.mrb[16].mxu0 %v632_v42  ;;  %1296 = vmatmul.mubr.bf16.vlgmr.msra.gmra.mrb[16].mxu1 %v632_v42 }
 0x437   :  { %743 = vmatpush1.bf16.msra.mxu0 %v1521_v3  ;;  %1300 = vmatpush3.bf16.msra.mxu1 %v1558_v9 }
 0x438   :  { %744 = vmatprep.subr.bf16.mxu0 %v1529_v4  ;;  %1301 = vmatprep.subr.bf16.mxu1 %v1482_v1 }
 0x439   :  { %774 = vmatprep.mubr.bf16.mxu0 %v1483_v2  ;;  %1315 = vmatprep.mubr.msk.bf16.mxu1 %vm1484_vm0, %v1482_v1 }
 0x43b   :  { %745 = vmatpush1.bf16.msra.mxu0 %v1535_v5  ;;  %1302 = vmatpush3.bf16.msra.mxu1 %v1577_v12 }
 0x43c   :  { %746 = vmatprep.subr.bf16.mxu0 %v1541_v6  ;;  %1303 = vmatprep.subr.bf16.mxu1 %v1482_v1 }
 0x43f   :  { %747 = vmatpush1.bf16.msra.mxu0 %v1547_v7  ;;  %1304 = vmatpush3.bf16.msra.mxu1 %v1589_v14 }
 0x440   :  { %748 = vmatprep.subr.bf16.mxu0 %v1553_v8  ;;  %1305 = vmatprep.subr.bf16.mxu1 %v1482_v1 }
 0x443   :  { %749 = vmatpush1.bf16.msra.mxu0 %v1564_v10  ;;  %1306 = vmatpush3.bf16.msra.mxu1 %v1608_v17 }
 0x444   :  { %750 = vmatprep.subr.bf16.mxu0 %v1571_v11  ;;  %1307 = vmatprep.subr.bf16.mxu1 %v1482_v1 }
 0x447   :  { %751 = vmatpush1.bf16.msra.mxu0 %v1582_v13  ;;  %1308 = vmatpush3.bf16.msra.mxu1 %v1627_v20 }
 0x448   :  { %752 = vmatprep.subr.bf16.mxu0 %v1595_v15  ;;  %1309 = vmatprep.subr.bf16.mxu1 %v1482_v1 }
 0x44b   :  { %753 = vmatpush1.bf16.msra.mxu0 %v1602_v16  ;;  %1310 = vmatpush3.bf16.msra.mxu1 %v1646_v23 }
 0x44c   :  { %754 = vmatprep.subr.bf16.mxu0 %v1614_v18  ;;  %1311 = vmatprep.subr.bf16.mxu1 %v1482_v1 }
 0x44f   :  { %755 = vmatpush1.bf16.msra.mxu0 %v1621_v19  ;;  %1312 = vmatpush3.bf16.msra.mxu1 %v1655_v24 }
 0x450   :  { %756 = vmatprep.subr.bf16.mxu0 %v1633_v21  ;;  %1313 = vmatprep.subr.bf16.mxu1 %v1482_v1 }
 0x453   :  { %757 = vmatpush1.bf16.msra.mxu0 %v1640_v22  ;;  %1314 = vmatpush3.bf16.msra.mxu1 %v1663_v26 }
 0x454   :  { %851 = vmatprep.subr.bf16.mxu0 %v1514_v0  ;;  %1319 = vmatprep.subr.bf16.mxu1 %v1482_v1 }
 0x509   :  { %v667_v44 = vpop.f32.mrb[16].mxu0  ;;  %v722_v47 = vpop.f32.mrb[16].mxu1 }
 0x50a   :  { %v674_v49 = vadd.f32 %v667_v44, %v629_v43  ;;  %v669_v50 = vpop.f32.mrb[17].mxu0  ;;  %v1297_v51 = vpop.f32.mrb[17].mxu1  ;;  %v723_v25 = vadd.f32 %v1709_v45, %v722_v47 }
 0x50b   :  { %v671_v52 = vpop.f32.mrb[18].mxu0  ;;  %v725_v53 = vpop.f32.mrb[18].mxu1  ;;  %v681_v56 = vadd.f32 %v669_v50, %v630_v48  ;;  %v740_v50 = vunpack.c.h.bf16 %v1903_v61  ;;  %v1475_v61 = vld [vmem:[%s2019_s1] ss:$8 sps:$4 sm:$0xff]  }
 0x50c   :  { %v1113_v54 = vmul.f32 -1.442695, %v674_v49  ;;  %v672_v46 = vpop.f32.mrb[19].mxu0  ;;  %v1298_v55 = vpop.f32.mrb[19].mxu1 }
 0x50d   :  { %v1114_v57 = vmul.f32 -1.442695, %v681_v56 }
 0x50e   :  { %1435 = vpow2.f32 %v1113_v54 }
 0x50f   :  { %1437 = vpow2.f32 %v1114_v57 }
 0x518   :  { %v1436_v58 = vpop.eup %1435 }
 0x519   :  { %v678_v59 = vadd.f32 1.0, %v1436_v58  ;;  %v1438_v60 = vpop.eup %1437 }
 0x51a   :  { %v685_v62 = vadd.f32 1.0, %v1438_v60 }
 0x51b   :  { %1439 = vrcp.f32 %v678_v59 }
 0x51c   :  { %1441 = vrcp.f32 %v685_v62  ;;  %v1476_v62 = vld [vmem:[%s2019_s1 + $0x14] ss:$8 sps:$4 sm:$0xff]  }
 0x525   :  { %v1440_v27 = vpop.eup %1439 }
 0x526   :  { %v728_v28 = vmul.f32 %v1440_v27, %v723_v25  ;;  %v1442_v30 = vpop.eup %1441  ;;  %v1480_v25 = vld [vmem:[%s2019_s1 + $0x34] ss:$8 sps:$4 sm:$0xff]  }
 0x527   :  { %v731_v31 = vsub.f32 1.0, %v1442_v30  ;;  %v733_v35 = vmul.f32 %v1442_v30, %v1858_v41  ;;  %v1120_v30 = vld [vmem:[%s2021_s0 + $0x50] ss:$12 sps:$4 sm:$0xff]  }
 0x528   :  { %v729_v29 = vadd.f32 %v728_v28, %v631_v63  ;;  %v1477_v63 = vld [vmem:[%s2019_s1 + $0x10] ss:$8 sps:$4 sm:$0xff]  }
 0x52a   :  { %1443 = vtanh.f32 %v729_v29 }
 0x534   :  { %v1444_v32 = vpop.eup %1443 }
 0x535   :  { %v732_v33 = vmul.f32 %v1444_v32, %v731_v31  ;;  %v849_v32 = vunpack.c.l.bf16 %v1120_v30 }
 0x537   :  { %v1908_v36 = vadd.f32 %v733_v35, %v732_v33 }
 0x539   :  { %v741_v37 = vpack.c.bf16 %v1908_v36, %v1908_v36 }
 0x53b   :  { %775 = vmatmul.mubr.bf16.vlgmr.msra.gmra.mrb[20].mxu0 %v741_v37  ;;  %1316 = vmatmul.mubr.bf16.vlgmr.msra.gmra.mrb[20].mxu1 %v741_v37 }
 0x53c   :  { %852 = vmatpush1.bf16.msra.mxu0 %v1521_v3  ;;  %1320 = vmatpush3.bf16.msra.mxu1 %v1558_v9  ;;  %v1115_v3 = vld [vmem:[%s2021_s0 + $0x3c] sm:$0xff] }
 0x53d   :  { %853 = vmatprep.subr.bf16.mxu0 %v1529_v4  ;;  %1321 = vmatprep.subr.bf16.mxu1 %v1482_v1  ;;  %v738_v4 = vunpack.c.l.bf16 %v1115_v3 }
 0x53e   :  { %883 = vmatprep.mubr.bf16.mxu0 %v1483_v2  ;;  %1335 = vmatprep.mubr.msk.bf16.mxu1 %vm1484_vm0, %v1482_v1 }
 0x540   :  { %854 = vmatpush1.bf16.msra.mxu0 %v1535_v5  ;;  %1322 = vmatpush3.bf16.msra.mxu1 %v1577_v12 }
 0x541   :  { %855 = vmatprep.subr.bf16.mxu0 %v1541_v6  ;;  %1323 = vmatprep.subr.bf16.mxu1 %v1482_v1 }
 0x544   :  { %856 = vmatpush1.bf16.msra.mxu0 %v1547_v7  ;;  %1324 = vmatpush3.bf16.msra.mxu1 %v1589_v14  ;;  %v739_v7 = vunpack.c.h.bf16 %v1115_v3 }
 0x545   :  { %857 = vmatprep.subr.bf16.mxu0 %v1553_v8  ;;  %1325 = vmatprep.subr.bf16.mxu1 %v1482_v1 }
 0x548   :  { %858 = vmatpush1.bf16.msra.mxu0 %v1564_v10  ;;  %1326 = vmatpush3.bf16.msra.mxu1 %v1608_v17 }
 0x549   :  { %859 = vmatprep.subr.bf16.mxu0 %v1571_v11  ;;  %1327 = vmatprep.subr.bf16.mxu1 %v1482_v1 }
 0x54c   :  { %860 = vmatpush1.bf16.msra.mxu0 %v1582_v13  ;;  %1328 = vmatpush3.bf16.msra.mxu1 %v1627_v20 }
 0x54d   :  { %861 = vmatprep.subr.bf16.mxu0 %v1595_v15  ;;  %1329 = vmatprep.subr.bf16.mxu1 %v1482_v1 }
 0x550   :  { %862 = vmatpush1.bf16.msra.mxu0 %v1602_v16  ;;  %1330 = vmatpush3.bf16.msra.mxu1 %v1646_v23 }
 0x551   :  { %863 = vmatprep.subr.bf16.mxu0 %v1614_v18  ;;  %1331 = vmatprep.subr.bf16.mxu1 %v1482_v1 }
 0x554   :  { %864 = vmatpush1.bf16.msra.mxu0 %v1621_v19  ;;  %1332 = vmatpush3.bf16.msra.mxu1 %v1655_v24 }
 0x555   :  { %865 = vmatprep.subr.bf16.mxu0 %v1633_v21  ;;  %1333 = vmatprep.subr.bf16.mxu1 %v1482_v1 }
 0x558   :  { %866 = vmatpush1.bf16.msra.mxu0 %v1640_v22  ;;  %1334 = vmatpush3.bf16.msra.mxu1 %v1663_v26 }
 0x559   :  { %960 = vmatprep.subr.bf16.mxu0 %v1514_v0  ;;  %1339 = vmatprep.subr.bf16.mxu1 %v1482_v1 }
 0x60e   :  { %v776_v5 = vpop.f32.mrb[20].mxu0  ;;  %v831_v6 = vpop.f32.mrb[20].mxu1 }
 0x60f   :  { %v783_v8 = vadd.f32 %v776_v5, %v738_v4  ;;  %v778_v10 = vpop.f32.mrb[21].mxu0  ;;  %v1317_v38 = vpop.f32.mrb[21].mxu1  ;;  %v832_v51 = vadd.f32 %v1709_v45, %v831_v6 }
 0x610   :  { %v780_v39 = vpop.f32.mrb[22].mxu0  ;;  %v834_v40 = vpop.f32.mrb[22].mxu1  ;;  %v790_v43 = vadd.f32 %v778_v10, %v739_v7  ;;  %v1123_v38 = vld [vmem:[%s2021_s0 + $0x54] sm:$0xff] }
 0x611   :  { %v1117_v41 = vmul.f32 -1.442695, %v783_v8  ;;  %v781_v42 = vpop.f32.mrb[23].mxu0  ;;  %v1318_v34 = vpop.f32.mrb[23].mxu1  ;;  %v956_v39 = vunpack.c.l.bf16 %v1123_v38 }
 0x612   :  { %v1118_v0 = vmul.f32 -1.442695, %v790_v43  ;;  %v957_v42 = vunpack.c.h.bf16 %v1123_v38 }
 0x613   :  { %1445 = vpow2.f32 %v1117_v41 }
 0x614   :  { %1447 = vpow2.f32 %v1118_v0 }
 0x61d   :  { %v1446_v44 = vpop.eup %1445 }
 0x61e   :  { %v787_v47 = vadd.f32 1.0, %v1446_v44  ;;  %v1448_v48 = vpop.eup %1447 }
 0x61f   :  { %v794_v49 = vadd.f32 1.0, %v1448_v48 }
 0x620   :  { %1449 = vrcp.f32 %v787_v47 }
 0x621   :  { %1451 = vrcp.f32 %v794_v49 }
 0x62a   :  { %v1450_v52 = vpop.eup %1449 }
 0x62b   :  { %v837_v53 = vmul.f32 %v1450_v52, %v832_v51  ;;  %v1452_v46 = vpop.eup %1451 }
 0x62c   :  { %v840_v55 = vsub.f32 1.0, %v1452_v46  ;;  %v842_v58 = vmul.f32 %v1452_v46, %v1908_v36 }
 0x62d   :  { %v838_v54 = vadd.f32 %v837_v53, %v740_v50 }
 0x62f   :  { %1453 = vtanh.f32 %v838_v54 }
 0x639   :  { %v1454_v56 = vpop.eup %1453 }
 0x63a   :  { %v841_v57 = vmul.f32 %v1454_v56, %v840_v55  ;;  %v958_v56 = vunpack.c.h.bf16 %v1120_v30 }
 0x63c   :  { %v1953_v59 = vadd.f32 %v842_v58, %v841_v57 }
 0x63e   :  { %v850_v60 = vpack.c.bf16 %v1953_v59, %v1953_v59 }
 0x640   :  { %884 = vmatmul.mubr.bf16.vlgmr.msra.gmra.mrb[24].mxu0 %v850_v60  ;;  %1336 = vmatmul.mubr.bf16.vlgmr.msra.gmra.mrb[24].mxu1 %v850_v60 }
 0x641   :  { %961 = vmatpush1.bf16.msra.mxu0 %v1475_v61  ;;  %1340 = vmatpush3.bf16.msra.mxu1 %v1558_v9  ;;  %v1478_v9 = vld [vmem:[%s2019_s1 + $0x24] ss:$8 sps:$4 sm:$0xff]  }
 0x642   :  { %962 = vmatprep.subr.bf16.mxu0 %v1476_v62  ;;  %1341 = vmatprep.subr.bf16.mxu1 %v1482_v1 }
 0x643   :  { %992 = vmatprep.mubr.bf16.mxu0 %v1483_v2  ;;  %1355 = vmatprep.mubr.msk.bf16.mxu1 %vm1484_vm0, %v1482_v1  ;;  %v1479_v2 = vld [vmem:[%s2019_s1 + $0x20] ss:$8 sps:$4 sm:$0xff]  }
 0x645   :  { %963 = vmatpush1.bf16.msra.mxu0 %v1477_v63  ;;  %1342 = vmatpush3.bf16.msra.mxu1 %v1577_v12  ;;  %v1481_v12 = vld [vmem:[%s2019_s1 + $0x30] ss:$8 sps:$4 sm:$0xff]  }
 0x646   :  { %964 = vmatprep.subr.bf16.mxu0 %v1478_v9  ;;  %1343 = vmatprep.subr.bf16.mxu1 %v1482_v1 }
 0x649   :  { %965 = vmatpush1.bf16.msra.mxu0 %v1479_v2  ;;  %1344 = vmatpush3.bf16.msra.mxu1 %v1589_v14 }
 0x64a   :  { %966 = vmatprep.subr.bf16.mxu0 %v1480_v25  ;;  %1345 = vmatprep.subr.bf16.mxu1 %v1482_v1 }
 0x64d   :  { %967 = vmatpush1.bf16.msra.mxu0 %v1481_v12  ;;  %1346 = vmatpush3.bf16.msra.mxu1 %v1608_v17 }
 0x64e   :  { %968 = vmatprep.subr.bf16.mxu0 %v1571_v11  ;;  %1347 = vmatprep.subr.bf16.mxu1 %v1482_v1  ;;  %v1119_v11 = vld [vmem:[%s2021_s0 + $0x48] sm:$0xff] }
 0x651   :  { %969 = vmatpush1.bf16.msra.mxu0 %v1582_v13  ;;  %1348 = vmatpush3.bf16.msra.mxu1 %v1627_v20  ;;  %v847_v13 = vunpack.c.l.bf16 %v1119_v11 }
 0x652   :  { %970 = vmatprep.subr.bf16.mxu0 %v1595_v15  ;;  %1349 = vmatprep.subr.bf16.mxu1 %v1482_v1 }
 0x655   :  { %971 = vmatpush1.bf16.msra.mxu0 %v1602_v16  ;;  %1350 = vmatpush3.bf16.msra.mxu1 %v1646_v23  ;;  %v848_v16 = vunpack.c.h.bf16 %v1119_v11 }
 0x656   :  { %972 = vmatprep.subr.bf16.mxu0 %v1614_v18  ;;  %1351 = vmatprep.subr.bf16.mxu1 %v1482_v1 }
 0x659   :  { %973 = vmatpush1.bf16.msra.mxu0 %v1621_v19  ;;  %1352 = vmatpush3.bf16.msra.mxu1 %v1655_v24 }
 0x65a   :  { %974 = vmatprep.subr.bf16.mxu0 %v1633_v21  ;;  %1353 = vmatprep.subr.bf16.mxu1 %v1482_v1 }
 0x65d   :  { %975 = vmatpush1.bf16.msra.mxu0 %v1640_v22  ;;  %1354 = vmatpush3.bf16.msra.mxu1 %v1663_v26 }
 0x713   :  { %v885_v14 = vpop.f32.mrb[24].mxu0  ;;  %v940_v15 = vpop.f32.mrb[24].mxu1 }
 0x714   :  { %v892_v17 = vadd.f32 %v885_v14, %v847_v13  ;;  %v887_v18 = vpop.f32.mrb[25].mxu0  ;;  %v1337_v19 = vpop.f32.mrb[25].mxu1  ;;  %v941_v33 = vadd.f32 %v1709_v45, %v940_v15 }
 0x715   :  { %v889_v20 = vpop.f32.mrb[26].mxu0  ;;  %v943_v23 = vpop.f32.mrb[26].mxu1  ;;  %v899_v27 = vadd.f32 %v887_v18, %v848_v16 }
 0x716   :  { %v1121_v21 = vmul.f32 -1.442695, %v892_v17  ;;  %v890_v24 = vpop.f32.mrb[27].mxu0  ;;  %v1338_v1 = vpop.f32.mrb[27].mxu1 }
 0x717   :  { %v1122_v22 = vmul.f32 -1.442695, %v899_v27 }
 0x718   :  { %1455 = vpow2.f32 %v1121_v21 }
 0x719   :  { %1457 = vpow2.f32 %v1122_v22 }
 0x722   :  { %v1456_v26 = vpop.eup %1455 }
 0x723   :  { %v896_v28 = vadd.f32 1.0, %v1456_v26  ;;  %v1458_v29 = vpop.eup %1457 }
 0x724   :  { %v903_v31 = vadd.f32 1.0, %v1458_v29 }
 0x725   :  { %1459 = vrcp.f32 %v896_v28 }
 0x726   :  { %1461 = vrcp.f32 %v903_v31 }
 0x72f   :  { %v1460_v35 = vpop.eup %1459 }
 0x730   :  { %v946_v36 = vmul.f32 %v1460_v35, %v941_v33  ;;  %v1462_v3 = vpop.eup %1461 }
 0x731   :  { %v949_v4 = vsub.f32 1.0, %v1462_v3  ;;  %v951_v7 = vmul.f32 %v1462_v3, %v1953_v59 }
 0x732   :  { %v947_v37 = vadd.f32 %v946_v36, %v849_v32 }
 0x734   :  { %1463 = vtanh.f32 %v947_v37 }
 0x73e   :  { %v1464_v5 = vpop.eup %1463 }
 0x73f   :  { %v950_v6 = vmul.f32 %v1464_v5, %v949_v4 }
 0x741   :  { %v952_v8 = vadd.f32 %v951_v7, %v950_v6 }
 0x743   :  { %v959_v10 = vpack.c.bf16 %v952_v8, %v952_v8 }
 0x745   :  { %993 = vmatmul.mubr.bf16.vlgmr.msra.gmra.mrb[28].mxu0 %v959_v10  ;;  %1356 = vmatmul.mubr.bf16.vlgmr.msra.gmra.mrb[28].mxu1 %v959_v10 }
 0x818   :  { %v994_v40 = vpop.f32.mrb[28].mxu0  ;;  %v1049_v41 = vpop.f32.mrb[28].mxu1 }
 0x819   :  { %v1001_v34 = vadd.f32 %v994_v40, %v956_v39  ;;  %v996_v43 = vpop.f32.mrb[29].mxu0  ;;  %v1357_v0 = vpop.f32.mrb[29].mxu1  ;;  %v1050_v57 = vadd.f32 %v1709_v45, %v1049_v41 }
 0x81a   :  { %v998_v44 = vpop.f32.mrb[30].mxu0  ;;  %v1052_v47 = vpop.f32.mrb[30].mxu1  ;;  %v1008_v51 = vadd.f32 %v996_v43, %v957_v42 }
 0x81b   :  { %v1125_v48 = vmul.f32 -1.442695, %v1001_v34  ;;  %v999_v49 = vpop.f32.mrb[31].mxu0  ;;  %v1358_v50 = vpop.f32.mrb[31].mxu1 }
 0x81c   :  { %v1126_v52 = vmul.f32 -1.442695, %v1008_v51 }
 0x81d   :  { %1465 = vpow2.f32 %v1125_v48 }
 0x81e   :  { %1467 = vpow2.f32 %v1126_v52 }
 0x827   :  { %v1466_v53 = vpop.eup %1465 }
 0x828   :  { %v1005_v54 = vadd.f32 1.0, %v1466_v53  ;;  %v1468_v46 = vpop.eup %1467 }
 0x829   :  { %v1012_v55 = vadd.f32 1.0, %v1468_v46 }
 0x82a   :  { %1469 = vrcp.f32 %v1005_v54 }
 0x82b   :  { %1471 = vrcp.f32 %v1012_v55 }
 0x834   :  { %v1470_v58 = vpop.eup %1469 }
 0x835   :  { %v1055_v59 = vmul.f32 %v1470_v58, %v1050_v57  ;;  %v1472_v61 = vpop.eup %1471 }
 0x836   :  { %v1058_v62 = vsub.f32 1.0, %v1472_v61  ;;  %v1060_v2 = vmul.f32 %v1472_v61, %v952_v8 }
 0x837   :  { %v1056_v60 = vadd.f32 %v1055_v59, %v958_v56 }
 0x839   :  { %1473 = vtanh.f32 %v1056_v60 }
 0x843   :  { %v1474_v63 = vpop.eup %1473 }
 0x844   :  { %v1059_v9 = vmul.f32 %v1474_v63, %v1058_v62 }
 0x846   :  { %v1061_v25 = vadd.f32 %v1060_v2, %v1059_v9 }
 0x848   :  { %1067 = vst [vmem:[%s2023_s4] sm:$0xff] %v1061_v25 }

</bundles_post_ra>
